<compile_context>
chip_gen: v7x
topology: tpu7x:2x2x1
jax: 0.10.0
libtpu: 0.0.40
codegen_flags: <defaults>
</compile_context>

<pallas_src>
import jax
import jax.numpy as jnp
from jax import lax
from jax.experimental import pallas as pl
from jax.experimental.pallas import tpu as pltpu

_NEG_BIG = -1e30  # effectively -inf for softmax padding (avoids inf arithmetic)


def _round_up(x, m):
    return ((x + m - 1) // m) * m


def lstm_classifier_kernel(x_ref, wih_ref, whh_ref, b_ref, wout_ref, bout_ref,
                           out_ref, xg_scr, h_all_scr, h_scr, c_scr):
    """Single invocation: full LSTM over T steps + Linear/softmax head.

    Shapes (already padded / re-laid by the wrapper):
      x_ref    : (T*Bp, N)    time-major flattened input
      wih_ref  : (N, 4*Hp)    gate-major blocks of W_ih^T (each gate = Hp lanes)
      whh_ref  : (Hp, 4*Hp)   gate-major blocks of W_hh^T
      b_ref    : (1, 4*Hp)    b_ih + b_hh (padded lanes = 0)
      wout_ref : (Hp, Cp)     W_out^T (padded rows/cols = 0)
      bout_ref : (1, Cp)      b_out  (padded lanes = -1e30)
      out_ref  : (T*Bp, Cp)   softmax probabilities
    """
    TB = x_ref.shape[0]
    Bp, Hp = h_scr.shape
    T = TB // Bp

    # ---- (1) input projection for ALL time steps: one big MXU matmul ----
    xg_scr[...] = (jnp.dot(x_ref[...], wih_ref[...],
                           preferred_element_type=jnp.float32)
                   + b_ref[...])

    h_scr[...] = jnp.zeros_like(h_scr)
    c_scr[...] = jnp.zeros_like(c_scr)

    # ---- (2) serial recurrence: only h_prev @ W_hh^T on the critical path ----
    def step(t, carry):
        row = pl.multiple_of(t * Bp, Bp)
        h_prev = h_scr[...]
        c_prev = c_scr[...]
        gates = (xg_scr[pl.ds(row, Bp), :]
                 + jnp.dot(h_prev, whh_ref[...],
                           preferred_element_type=jnp.float32))
        # PyTorch gate order: input, forget, cell(g), output.
        # Each slice is a whole number of 128-lane vregs because Hp % 128 == 0.
        i_g = jax.nn.sigmoid(gates[:, 0 * Hp:1 * Hp])
        f_g = jax.nn.sigmoid(gates[:, 1 * Hp:2 * Hp])
        g_g = jnp.tanh(gates[:, 2 * Hp:3 * Hp])
        o_g = jax.nn.sigmoid(gates[:, 3 * Hp:4 * Hp])
        c_new = f_g * c_prev + i_g * g_g
        h_new = o_g * jnp.tanh(c_new)
        c_scr[...] = c_new
        h_scr[...] = h_new
        h_all_scr[pl.ds(row, Bp), :] = h_new
        return carry

    lax.fori_loop(0, T, step, 0, unroll=True)

    # ---- (3) output head (Linear + softmax) once over all T*Bp rows ----
    # dropout(p=0.2) is identity in eval/inference mode.
    z = (jnp.dot(h_all_scr[...], wout_ref[...],
                 preferred_element_type=jnp.float32) + bout_ref[...])
    z = z - jnp.max(z, axis=-1, keepdims=True)
    e = jnp.exp(z)
    p = e * pl.reciprocal(jnp.sum(e, axis=-1, keepdims=True), approx=True)
    out_ref[...] = p.astype(out_ref.dtype)  # single lane-dense store


def lstm_classifier_forward(series, params):
    """series: (B, T, N) float32 -> p_pred: (B, T, C) float32."""
    B, T, N = series.shape
    H = params["w_hh"].shape[1]
    C = params["w_out"].shape[0]

    Hp = _round_up(H, 128)   # lane-align each gate block
    Cp = _round_up(C, 128)   # lane-dense output store
    Bp = _round_up(B, 8)     # fill sublanes

    # --- re-lay / pad weights: gate-major blocks of width Hp along the lane axis ---
    w_ih = params["w_ih"].reshape(4, H, N)            # (gate, out, in)
    w_hh = params["w_hh"].reshape(4, H, H)            # (gate, out, in)
    b = (params["b_ih"] + params["b_hh"]).reshape(4, H)

    wih_pad = jnp.zeros((4, Hp, N), jnp.float32).at[:, :H, :].set(w_ih)
    wih_pad = wih_pad.transpose(2, 0, 1).reshape(N, 4 * Hp)            # (N, 4Hp)
    whh_pad = jnp.zeros((4, Hp, Hp), jnp.float32).at[:, :H, :H].set(w_hh)
    whh_pad = whh_pad.transpose(2, 0, 1).reshape(Hp, 4 * Hp)           # (Hp, 4Hp)
    b_pad = jnp.zeros((4, Hp), jnp.float32).at[:, :H].set(b).reshape(1, 4 * Hp)

    wout_pad = jnp.zeros((Hp, Cp), jnp.float32).at[:H, :C].set(params["w_out"].T)
    bout_pad = jnp.full((1, Cp), _NEG_BIG, jnp.float32).at[0, :C].set(params["b_out"])

    # --- pad + flatten input to time-major (T*Bp, N) ---
    x_tbn = jnp.transpose(series, (1, 0, 2)).astype(jnp.float32)       # (T, B, N)
    x_flat = jnp.zeros((T, Bp, N), jnp.float32).at[:, :B, :].set(x_tbn)
    x_flat = x_flat.reshape(T * Bp, N)

    out_flat = pl.pallas_call(
        lstm_classifier_kernel,
        out_shape=jax.ShapeDtypeStruct((T * Bp, Cp), jnp.float32),
        in_specs=[pl.BlockSpec(memory_space=pltpu.MemorySpace.VMEM)] * 6,
        out_specs=pl.BlockSpec(memory_space=pltpu.MemorySpace.VMEM),
        scratch_shapes=[
            pltpu.VMEM((T * Bp, 4 * Hp), jnp.float32),  # precomputed input gates
            pltpu.VMEM((T * Bp, Hp), jnp.float32),      # all hidden states
            pltpu.VMEM((Bp, Hp), jnp.float32),          # h carry
            pltpu.VMEM((Bp, Hp), jnp.float32),          # c carry
        ],
    )(x_flat, wih_pad, whh_pad, b_pad, wout_pad, bout_pad)

    out = out_flat.reshape(T, Bp, Cp)[:, :B, :C]
    return jnp.transpose(out, (1, 0, 2))               # (B, T, C)


def lstm_classifier_reference(series, params):
    """Pure-JAX reference mirroring PyTorch LSTM + Linear + softmax (eval mode)."""
    with jax.default_matmul_precision("float32"):
        w_ih, w_hh = params["w_ih"], params["w_hh"]
        b = params["b_ih"] + params["b_hh"]
        w_out, b_out = params["w_out"], params["b_out"]
        H = w_hh.shape[1]
        B, T, N = series.shape

        def step(carry, x_t):
            h, c = carry
            gates = x_t @ w_ih.T + h @ w_hh.T + b
            i = jax.nn.sigmoid(gates[:, 0:H])
            f = jax.nn.sigmoid(gates[:, H:2 * H])
            g = jnp.tanh(gates[:, 2 * H:3 * H])
            o = jax.nn.sigmoid(gates[:, 3 * H:4 * H])
            c = f * c + i * g
            h = o * jnp.tanh(c)
            return (h, c), h

        init = (jnp.zeros((B, H), jnp.float32), jnp.zeros((B, H), jnp.float32))
        _, hs = lax.scan(step, init, jnp.transpose(series, (1, 0, 2)))
        hs = jnp.transpose(hs, (1, 0, 2))               # (B, T, H)
        z = hs @ w_out.T + b_out
        return jax.nn.softmax(z, axis=-1)


def init_params(key, input_dim, hidden_dim, output_dim):
    """Deterministic synthetic params mirroring nn.LSTM + Linear shapes/inits."""
    k = jax.random.split(key, 6)
    H, N, C = hidden_dim, input_dim, output_dim
    bound = 1.0 / jnp.sqrt(jnp.float32(H))  # PyTorch LSTM default: U(-1/sqrt(H), 1/sqrt(H))
    w_ih = jax.random.uniform(k[0], (4 * H, N), jnp.float32, -bound, bound)
    w_hh = jax.random.uniform(k[1], (4 * H, H), jnp.float32, -bound, bound)
    b_ih = jax.random.uniform(k[2], (4 * H,), jnp.float32, -bound, bound)
    b_hh = jax.random.uniform(k[3], (4 * H,), jnp.float32, -bound, bound)
    # output Linear: xavier_normal_ weight, uniform_(0,1) bias (as in __init__)
    xavier_std = jnp.sqrt(2.0 / jnp.float32(H + C))
    w_out = jax.random.normal(k[4], (C, H), jnp.float32) * xavier_std
    b_out = jax.random.uniform(k[5], (C,), jnp.float32, 0.0, 1.0)
    return {"w_ih": w_ih, "w_hh": w_hh, "b_ih": b_ih, "b_hh": b_hh,
            "w_out": w_out, "b_out": b_out}


if __name__ == "__main__":
    B, T, N, H, C = 2, 8, 16, 32, 4  # batch, seq, input_dim, hidden_dim, output_dim
    key = jax.random.PRNGKey(0)
    k_data, k_param = jax.random.split(key)
    series = jax.random.normal(k_data, (B, T, N), jnp.float32)
    params = init_params(k_param, N, H, C)

    p_pred = lstm_classifier_forward(series, params)
    jax.block_until_ready(p_pred)
    assert p_pred.shape == (B, T, C)

    p_ref = lstm_classifier_reference(series, params)
    max_err = float(jnp.max(jnp.abs(p_pred - p_ref)))
    assert max_err < 2e-2, f"kernel mismatch vs pure-JAX reference: {max_err}"
    print("KERNEL_OK")
</pallas_src>

<mosaic_0001>
module attributes {stable_mosaic.version = 11 : i64} {
  func.func @lstm_classifier_kernel(%arg0: memref<64x16xf32, #tpu.memory_space<vmem>>, %arg1: memref<16x512xf32, #tpu.memory_space<vmem>>, %arg2: memref<128x512xf32, #tpu.memory_space<vmem>>, %arg3: memref<1x512xf32, #tpu.memory_space<vmem>>, %arg4: memref<128x128xf32, #tpu.memory_space<vmem>>, %arg5: memref<1x128xf32, #tpu.memory_space<vmem>>, %arg6: memref<64x128xf32, #tpu.memory_space<vmem>>, %arg7: memref<64x512xf32, #tpu.memory_space<vmem>>, %arg8: memref<64x128xf32, #tpu.memory_space<vmem>>, %arg9: memref<8x128xf32, #tpu.memory_space<vmem>>, %arg10: memref<8x128xf32, #tpu.memory_space<vmem>>) attributes {dimension_semantics = [], scalar_prefetch = 0 : i64, scratch_operands = 4 : i64, tpu.core_type = #tpu.core_type<tc>} {
    %c0 = arith.constant 0 : index
    %c0_0 = arith.constant 0 : index
    %0 = vector.load %arg0[%c0, %c0_0] : memref<64x16xf32, #tpu.memory_space<vmem>>, vector<64x16xf32>
    %c0_1 = arith.constant 0 : index
    %c0_2 = arith.constant 0 : index
    %1 = vector.load %arg1[%c0_1, %c0_2] : memref<16x512xf32, #tpu.memory_space<vmem>>, vector<16x512xf32>
    %cst = arith.constant dense<0.000000e+00> : vector<64x512xf32>
    %2 = tpu.matmul %0, %1, %cst {dimension_numbers = #tpu.dot_dimension_numbers<[1], [0], [0], [1], [0, 0, 1, 1], [], []>} : vector<64x16xf32>, vector<16x512xf32>, vector<64x512xf32> -> vector<64x512xf32>
    %c0_3 = arith.constant 0 : index
    %c0_4 = arith.constant 0 : index
    %3 = vector.load %arg3[%c0_3, %c0_4] : memref<1x512xf32, #tpu.memory_space<vmem>>, vector<1x512xf32>
    %4 = vector.broadcast %3 : vector<1x512xf32> to vector<64x512xf32>
    %5 = arith.addf %2, %4 : vector<64x512xf32>
    %c0_5 = arith.constant 0 : index
    %c0_6 = arith.constant 0 : index
    %6 = vector.load %arg7[%c0_5, %c0_6] : memref<64x512xf32, #tpu.memory_space<vmem>>, vector<64x512xf32>
    tpu.vector_store %arg7[%c0_5, %c0_6], %5 {strides = array<i32>} : memref<64x512xf32, #tpu.memory_space<vmem>>, vector<64x512xf32>,
    %cst_7 = arith.constant 0.000000e+00 : f32
    %7 = vector.broadcast %cst_7 : f32 to vector<8x128xf32>
    %c0_8 = arith.constant 0 : index
    %c0_9 = arith.constant 0 : index
    %8 = vector.load %arg9[%c0_8, %c0_9] : memref<8x128xf32, #tpu.memory_space<vmem>>, vector<8x128xf32>
    tpu.vector_store %arg9[%c0_8, %c0_9], %7 {strides = array<i32>} : memref<8x128xf32, #tpu.memory_space<vmem>>, vector<8x128xf32>,
    %cst_10 = arith.constant 0.000000e+00 : f32
    %9 = vector.broadcast %cst_10 : f32 to vector<8x128xf32>
    %c0_11 = arith.constant 0 : index
    %c0_12 = arith.constant 0 : index
    %10 = vector.load %arg10[%c0_11, %c0_12] : memref<8x128xf32, #tpu.memory_space<vmem>>, vector<8x128xf32>
    tpu.vector_store %arg10[%c0_11, %c0_12], %9 {strides = array<i32>} : memref<8x128xf32, #tpu.memory_space<vmem>>, vector<8x128xf32>,
    %c0_i32 = arith.constant 0 : i32
    %c8_i32 = arith.constant 8 : i32
    %11 = arith.muli %c0_i32, %c8_i32 : i32
    %12 = tpu.assume_multiple %11, 8 : i32
    %c0_13 = arith.constant 0 : index
    %c0_14 = arith.constant 0 : index
    %13 = vector.load %arg9[%c0_13, %c0_14] : memref<8x128xf32, #tpu.memory_space<vmem>>, vector<8x128xf32>
    %c0_15 = arith.constant 0 : index
    %c0_16 = arith.constant 0 : index
    %14 = vector.load %arg10[%c0_15, %c0_16] : memref<8x128xf32, #tpu.memory_space<vmem>>, vector<8x128xf32>
    %15 = arith.index_cast %12 : i32 to index
    %c0_17 = arith.constant 0 : index
    %16 = vector.load %arg7[%15, %c0_17] : memref<64x512xf32, #tpu.memory_space<vmem>>, vector<8x512xf32>
    %c0_18 = arith.constant 0 : index
    %c0_19 = arith.constant 0 : index
    %17 = vector.load %arg2[%c0_18, %c0_19] : memref<128x512xf32, #tpu.memory_space<vmem>>, vector<128x512xf32>
    %cst_20 = arith.constant dense<0.000000e+00> : vector<8x512xf32>
    %18 = tpu.matmul %13, %17, %cst_20 {dimension_numbers = #tpu.dot_dimension_numbers<[1], [0], [0], [1], [0, 0, 1, 1], [], []>} : vector<8x128xf32>, vector<128x512xf32>, vector<8x512xf32> -> vector<8x512xf32>
    %19 = arith.addf %16, %18 : vector<8x512xf32>
    %20 = vector.extract_strided_slice %19 {offsets = [0, 0], sizes = [8, 128], strides = [1, 1]} : vector<8x512xf32> to vector<8x128xf32>
    %21 = arith.negf %20 : vector<8x128xf32>
    %22 = math.exp %21 : vector<8x128xf32>
    %cst_21 = arith.constant 1.000000e+00 : f32
    %23 = vector.broadcast %cst_21 : f32 to vector<8x128xf32>
    %24 = arith.addf %23, %22 : vector<8x128xf32>
    %25 = arith.divf %23, %24 : vector<8x128xf32>
    %26 = vector.extract_strided_slice %19 {offsets = [0, 128], sizes = [8, 128], strides = [1, 1]} : vector<8x512xf32> to vector<8x128xf32>
    %27 = arith.negf %26 : vector<8x128xf32>
    %28 = math.exp %27 : vector<8x128xf32>
    %cst_22 = arith.constant 1.000000e+00 : f32
    %29 = vector.broadcast %cst_22 : f32 to vector<8x128xf32>
    %30 = arith.addf %29, %28 : vector<8x128xf32>
    %31 = arith.divf %29, %30 : vector<8x128xf32>
    %32 = vector.extract_strided_slice %19 {offsets = [0, 256], sizes = [8, 128], strides = [1, 1]} : vector<8x512xf32> to vector<8x128xf32>
    %33 = math.tanh %32 : vector<8x128xf32>
    %34 = vector.extract_strided_slice %19 {offsets = [0, 384], sizes = [8, 128], strides = [1, 1]} : vector<8x512xf32> to vector<8x128xf32>
    %35 = arith.negf %34 : vector<8x128xf32>
    %36 = math.exp %35 : vector<8x128xf32>
    %cst_23 = arith.constant 1.000000e+00 : f32
    %37 = vector.broadcast %cst_23 : f32 to vector<8x128xf32>
    %38 = arith.addf %37, %36 : vector<8x128xf32>
    %39 = arith.divf %37, %38 : vector<8x128xf32>
    %40 = arith.mulf %31, %14 : vector<8x128xf32>
    %41 = arith.mulf %25, %33 : vector<8x128xf32>
    %42 = arith.addf %40, %41 : vector<8x128xf32>
    %43 = math.tanh %42 : vector<8x128xf32>
    %44 = arith.mulf %39, %43 : vector<8x128xf32>
    %c0_24 = arith.constant 0 : index
    %c0_25 = arith.constant 0 : index
    %45 = vector.load %arg10[%c0_24, %c0_25] : memref<8x128xf32, #tpu.memory_space<vmem>>, vector<8x128xf32>
    tpu.vector_store %arg10[%c0_24, %c0_25], %42 {strides = array<i32>} : memref<8x128xf32, #tpu.memory_space<vmem>>, vector<8x128xf32>,
    %c0_26 = arith.constant 0 : index
    %c0_27 = arith.constant 0 : index
    %46 = vector.load %arg9[%c0_26, %c0_27] : memref<8x128xf32, #tpu.memory_space<vmem>>, vector<8x128xf32>
    tpu.vector_store %arg9[%c0_26, %c0_27], %44 {strides = array<i32>} : memref<8x128xf32, #tpu.memory_space<vmem>>, vector<8x128xf32>,
    %47 = arith.index_cast %12 : i32 to index
    %c0_28 = arith.constant 0 : index
    %48 = vector.load %arg8[%47, %c0_28] : memref<64x128xf32, #tpu.memory_space<vmem>>, vector<8x128xf32>
    tpu.vector_store %arg8[%47, %c0_28], %44 {strides = array<i32>} : memref<64x128xf32, #tpu.memory_space<vmem>>, vector<8x128xf32>,
    %c1_i32 = arith.constant 1 : i32
    %c8_i32_29 = arith.constant 8 : i32
    %49 = arith.muli %c1_i32, %c8_i32_29 : i32
    %50 = tpu.assume_multiple %49, 8 : i32
    %c0_30 = arith.constant 0 : index
    %c0_31 = arith.constant 0 : index
    %51 = vector.load %arg9[%c0_30, %c0_31] : memref<8x128xf32, #tpu.memory_space<vmem>>, vector<8x128xf32>
    %c0_32 = arith.constant 0 : index
    %c0_33 = arith.constant 0 : index
    %52 = vector.load %arg10[%c0_32, %c0_33] : memref<8x128xf32, #tpu.memory_space<vmem>>, vector<8x128xf32>
    %53 = arith.index_cast %50 : i32 to index
    %c0_34 = arith.constant 0 : index
    %54 = vector.load %arg7[%53, %c0_34] : memref<64x512xf32, #tpu.memory_space<vmem>>, vector<8x512xf32>
    %c0_35 = arith.constant 0 : index
    %c0_36 = arith.constant 0 : index
    %55 = vector.load %arg2[%c0_35, %c0_36] : memref<128x512xf32, #tpu.memory_space<vmem>>, vector<128x512xf32>
    %cst_37 = arith.constant dense<0.000000e+00> : vector<8x512xf32>
    %56 = tpu.matmul %51, %55, %cst_37 {dimension_numbers = #tpu.dot_dimension_numbers<[1], [0], [0], [1], [0, 0, 1, 1], [], []>} : vector<8x128xf32>, vector<128x512xf32>, vector<8x512xf32> -> vector<8x512xf32>
    %57 = arith.addf %54, %56 : vector<8x512xf32>
    %58 = vector.extract_strided_slice %57 {offsets = [0, 0], sizes = [8, 128], strides = [1, 1]} : vector<8x512xf32> to vector<8x128xf32>
    %59 = arith.negf %58 : vector<8x128xf32>
    %60 = math.exp %59 : vector<8x128xf32>
    %cst_38 = arith.constant 1.000000e+00 : f32
    %61 = vector.broadcast %cst_38 : f32 to vector<8x128xf32>
    %62 = arith.addf %61, %60 : vector<8x128xf32>
    %63 = arith.divf %61, %62 : vector<8x128xf32>
    %64 = vector.extract_strided_slice %57 {offsets = [0, 128], sizes = [8, 128], strides = [1, 1]} : vector<8x512xf32> to vector<8x128xf32>
    %65 = arith.negf %64 : vector<8x128xf32>
    %66 = math.exp %65 : vector<8x128xf32>
    %cst_39 = arith.constant 1.000000e+00 : f32
    %67 = vector.broadcast %cst_39 : f32 to vector<8x128xf32>
    %68 = arith.addf %67, %66 : vector<8x128xf32>
    %69 = arith.divf %67, %68 : vector<8x128xf32>
    %70 = vector.extract_strided_slice %57 {offsets = [0, 256], sizes = [8, 128], strides = [1, 1]} : vector<8x512xf32> to vector<8x128xf32>
    %71 = math.tanh %70 : vector<8x128xf32>
    %72 = vector.extract_strided_slice %57 {offsets = [0, 384], sizes = [8, 128], strides = [1, 1]} : vector<8x512xf32> to vector<8x128xf32>
    %73 = arith.negf %72 : vector<8x128xf32>
    %74 = math.exp %73 : vector<8x128xf32>
    %cst_40 = arith.constant 1.000000e+00 : f32
    %75 = vector.broadcast %cst_40 : f32 to vector<8x128xf32>
    %76 = arith.addf %75, %74 : vector<8x128xf32>
    %77 = arith.divf %75, %76 : vector<8x128xf32>
    %78 = arith.mulf %69, %52 : vector<8x128xf32>
    %79 = arith.mulf %63, %71 : vector<8x128xf32>
    %80 = arith.addf %78, %79 : vector<8x128xf32>
    %81 = math.tanh %80 : vector<8x128xf32>
    %82 = arith.mulf %77, %81 : vector<8x128xf32>
    %c0_41 = arith.constant 0 : index
    %c0_42 = arith.constant 0 : index
    %83 = vector.load %arg10[%c0_41, %c0_42] : memref<8x128xf32, #tpu.memory_space<vmem>>, vector<8x128xf32>
    tpu.vector_store %arg10[%c0_41, %c0_42], %80 {strides = array<i32>} : memref<8x128xf32, #tpu.memory_space<vmem>>, vector<8x128xf32>,
    %c0_43 = arith.constant 0 : index
    %c0_44 = arith.constant 0 : index
    %84 = vector.load %arg9[%c0_43, %c0_44] : memref<8x128xf32, #tpu.memory_space<vmem>>, vector<8x128xf32>
    tpu.vector_store %arg9[%c0_43, %c0_44], %82 {strides = array<i32>} : memref<8x128xf32, #tpu.memory_space<vmem>>, vector<8x128xf32>,
    %85 = arith.index_cast %50 : i32 to index
    %c0_45 = arith.constant 0 : index
    %86 = vector.load %arg8[%85, %c0_45] : memref<64x128xf32, #tpu.memory_space<vmem>>, vector<8x128xf32>
    tpu.vector_store %arg8[%85, %c0_45], %82 {strides = array<i32>} : memref<64x128xf32, #tpu.memory_space<vmem>>, vector<8x128xf32>,
    %c2_i32 = arith.constant 2 : i32
    %c8_i32_46 = arith.constant 8 : i32
    %87 = arith.muli %c2_i32, %c8_i32_46 : i32
    %88 = tpu.assume_multiple %87, 8 : i32
    %c0_47 = arith.constant 0 : index
    %c0_48 = arith.constant 0 : index
    %89 = vector.load %arg9[%c0_47, %c0_48] : memref<8x128xf32, #tpu.memory_space<vmem>>, vector<8x128xf32>
    %c0_49 = arith.constant 0 : index
    %c0_50 = arith.constant 0 : index
    %90 = vector.load %arg10[%c0_49, %c0_50] : memref<8x128xf32, #tpu.memory_space<vmem>>, vector<8x128xf32>
    %91 = arith.index_cast %88 : i32 to index
    %c0_51 = arith.constant 0 : index
    %92 = vector.load %arg7[%91, %c0_51] : memref<64x512xf32, #tpu.memory_space<vmem>>, vector<8x512xf32>
    %c0_52 = arith.constant 0 : index
    %c0_53 = arith.constant 0 : index
    %93 = vector.load %arg2[%c0_52, %c0_53] : memref<128x512xf32, #tpu.memory_space<vmem>>, vector<128x512xf32>
    %cst_54 = arith.constant dense<0.000000e+00> : vector<8x512xf32>
    %94 = tpu.matmul %89, %93, %cst_54 {dimension_numbers = #tpu.dot_dimension_numbers<[1], [0], [0], [1], [0, 0, 1, 1], [], []>} : vector<8x128xf32>, vector<128x512xf32>, vector<8x512xf32> -> vector<8x512xf32>
    %95 = arith.addf %92, %94 : vector<8x512xf32>
    %96 = vector.extract_strided_slice %95 {offsets = [0, 0], sizes = [8, 128], strides = [1, 1]} : vector<8x512xf32> to vector<8x128xf32>
    %97 = arith.negf %96 : vector<8x128xf32>
    %98 = math.exp %97 : vector<8x128xf32>
    %cst_55 = arith.constant 1.000000e+00 : f32
    %99 = vector.broadcast %cst_55 : f32 to vector<8x128xf32>
    %100 = arith.addf %99, %98 : vector<8x128xf32>
    %101 = arith.divf %99, %100 : vector<8x128xf32>
    %102 = vector.extract_strided_slice %95 {offsets = [0, 128], sizes = [8, 128], strides = [1, 1]} : vector<8x512xf32> to vector<8x128xf32>
    %103 = arith.negf %102 : vector<8x128xf32>
    %104 = math.exp %103 : vector<8x128xf32>
    %cst_56 = arith.constant 1.000000e+00 : f32
    %105 = vector.broadcast %cst_56 : f32 to vector<8x128xf32>
    %106 = arith.addf %105, %104 : vector<8x128xf32>
    %107 = arith.divf %105, %106 : vector<8x128xf32>
    %108 = vector.extract_strided_slice %95 {offsets = [0, 256], sizes = [8, 128], strides = [1, 1]} : vector<8x512xf32> to vector<8x128xf32>
    %109 = math.tanh %108 : vector<8x128xf32>
    %110 = vector.extract_strided_slice %95 {offsets = [0, 384], sizes = [8, 128], strides = [1, 1]} : vector<8x512xf32> to vector<8x128xf32>
    %111 = arith.negf %110 : vector<8x128xf32>
    %112 = math.exp %111 : vector<8x128xf32>
    %cst_57 = arith.constant 1.000000e+00 : f32
    %113 = vector.broadcast %cst_57 : f32 to vector<8x128xf32>
    %114 = arith.addf %113, %112 : vector<8x128xf32>
    %115 = arith.divf %113, %114 : vector<8x128xf32>
    %116 = arith.mulf %107, %90 : vector<8x128xf32>
    %117 = arith.mulf %101, %109 : vector<8x128xf32>
    %118 = arith.addf %116, %117 : vector<8x128xf32>
    %119 = math.tanh %118 : vector<8x128xf32>
    %120 = arith.mulf %115, %119 : vector<8x128xf32>
    %c0_58 = arith.constant 0 : index
    %c0_59 = arith.constant 0 : index
    %121 = vector.load %arg10[%c0_58, %c0_59] : memref<8x128xf32, #tpu.memory_space<vmem>>, vector<8x128xf32>
    tpu.vector_store %arg10[%c0_58, %c0_59], %118 {strides = array<i32>} : memref<8x128xf32, #tpu.memory_space<vmem>>, vector<8x128xf32>,
    %c0_60 = arith.constant 0 : index
    %c0_61 = arith.constant 0 : index
    %122 = vector.load %arg9[%c0_60, %c0_61] : memref<8x128xf32, #tpu.memory_space<vmem>>, vector<8x128xf32>
    tpu.vector_store %arg9[%c0_60, %c0_61], %120 {strides = array<i32>} : memref<8x128xf32, #tpu.memory_space<vmem>>, vector<8x128xf32>,
    %123 = arith.index_cast %88 : i32 to index
    %c0_62 = arith.constant 0 : index
    %124 = vector.load %arg8[%123, %c0_62] : memref<64x128xf32, #tpu.memory_space<vmem>>, vector<8x128xf32>
    tpu.vector_store %arg8[%123, %c0_62], %120 {strides = array<i32>} : memref<64x128xf32, #tpu.memory_space<vmem>>, vector<8x128xf32>,
    %c3_i32 = arith.constant 3 : i32
    %c8_i32_63 = arith.constant 8 : i32
    %125 = arith.muli %c3_i32, %c8_i32_63 : i32
    %126 = tpu.assume_multiple %125, 8 : i32
    %c0_64 = arith.constant 0 : index
    %c0_65 = arith.constant 0 : index
    %127 = vector.load %arg9[%c0_64, %c0_65] : memref<8x128xf32, #tpu.memory_space<vmem>>, vector<8x128xf32>
    %c0_66 = arith.constant 0 : index
    %c0_67 = arith.constant 0 : index
    %128 = vector.load %arg10[%c0_66, %c0_67] : memref<8x128xf32, #tpu.memory_space<vmem>>, vector<8x128xf32>
    %129 = arith.index_cast %126 : i32 to index
    %c0_68 = arith.constant 0 : index
    %130 = vector.load %arg7[%129, %c0_68] : memref<64x512xf32, #tpu.memory_space<vmem>>, vector<8x512xf32>
    %c0_69 = arith.constant 0 : index
    %c0_70 = arith.constant 0 : index
    %131 = vector.load %arg2[%c0_69, %c0_70] : memref<128x512xf32, #tpu.memory_space<vmem>>, vector<128x512xf32>
    %cst_71 = arith.constant dense<0.000000e+00> : vector<8x512xf32>
    %132 = tpu.matmul %127, %131, %cst_71 {dimension_numbers = #tpu.dot_dimension_numbers<[1], [0], [0], [1], [0, 0, 1, 1], [], []>} : vector<8x128xf32>, vector<128x512xf32>, vector<8x512xf32> -> vector<8x512xf32>
    %133 = arith.addf %130, %132 : vector<8x512xf32>
    %134 = vector.extract_strided_slice %133 {offsets = [0, 0], sizes = [8, 128], strides = [1, 1]} : vector<8x512xf32> to vector<8x128xf32>
    %135 = arith.negf %134 : vector<8x128xf32>
    %136 = math.exp %135 : vector<8x128xf32>
    %cst_72 = arith.constant 1.000000e+00 : f32
    %137 = vector.broadcast %cst_72 : f32 to vector<8x128xf32>
    %138 = arith.addf %137, %136 : vector<8x128xf32>
    %139 = arith.divf %137, %138 : vector<8x128xf32>
    %140 = vector.extract_strided_slice %133 {offsets = [0, 128], sizes = [8, 128], strides = [1, 1]} : vector<8x512xf32> to vector<8x128xf32>
    %141 = arith.negf %140 : vector<8x128xf32>
    %142 = math.exp %141 : vector<8x128xf32>
    %cst_73 = arith.constant 1.000000e+00 : f32
    %143 = vector.broadcast %cst_73 : f32 to vector<8x128xf32>
    %144 = arith.addf %143, %142 : vector<8x128xf32>
    %145 = arith.divf %143, %144 : vector<8x128xf32>
    %146 = vector.extract_strided_slice %133 {offsets = [0, 256], sizes = [8, 128], strides = [1, 1]} : vector<8x512xf32> to vector<8x128xf32>
    %147 = math.tanh %146 : vector<8x128xf32>
    %148 = vector.extract_strided_slice %133 {offsets = [0, 384], sizes = [8, 128], strides = [1, 1]} : vector<8x512xf32> to vector<8x128xf32>
    %149 = arith.negf %148 : vector<8x128xf32>
    %150 = math.exp %149 : vector<8x128xf32>
    %cst_74 = arith.constant 1.000000e+00 : f32
    %151 = vector.broadcast %cst_74 : f32 to vector<8x128xf32>
    %152 = arith.addf %151, %150 : vector<8x128xf32>
    %153 = arith.divf %151, %152 : vector<8x128xf32>
    %154 = arith.mulf %145, %128 : vector<8x128xf32>
    %155 = arith.mulf %139, %147 : vector<8x128xf32>
    %156 = arith.addf %154, %155 : vector<8x128xf32>
    %157 = math.tanh %156 : vector<8x128xf32>
    %158 = arith.mulf %153, %157 : vector<8x128xf32>
    %c0_75 = arith.constant 0 : index
    %c0_76 = arith.constant 0 : index
    %159 = vector.load %arg10[%c0_75, %c0_76] : memref<8x128xf32, #tpu.memory_space<vmem>>, vector<8x128xf32>
    tpu.vector_store %arg10[%c0_75, %c0_76], %156 {strides = array<i32>} : memref<8x128xf32, #tpu.memory_space<vmem>>, vector<8x128xf32>,
    %c0_77 = arith.constant 0 : index
    %c0_78 = arith.constant 0 : index
    %160 = vector.load %arg9[%c0_77, %c0_78] : memref<8x128xf32, #tpu.memory_space<vmem>>, vector<8x128xf32>
    tpu.vector_store %arg9[%c0_77, %c0_78], %158 {strides = array<i32>} : memref<8x128xf32, #tpu.memory_space<vmem>>, vector<8x128xf32>,
    %161 = arith.index_cast %126 : i32 to index
    %c0_79 = arith.constant 0 : index
    %162 = vector.load %arg8[%161, %c0_79] : memref<64x128xf32, #tpu.memory_space<vmem>>, vector<8x128xf32>
    tpu.vector_store %arg8[%161, %c0_79], %158 {strides = array<i32>} : memref<64x128xf32, #tpu.memory_space<vmem>>, vector<8x128xf32>,
    %c4_i32 = arith.constant 4 : i32
    %c8_i32_80 = arith.constant 8 : i32
    %163 = arith.muli %c4_i32, %c8_i32_80 : i32
    %164 = tpu.assume_multiple %163, 8 : i32
    %c0_81 = arith.constant 0 : index
    %c0_82 = arith.constant 0 : index
    %165 = vector.load %arg9[%c0_81, %c0_82] : memref<8x128xf32, #tpu.memory_space<vmem>>, vector<8x128xf32>
    %c0_83 = arith.constant 0 : index
    %c0_84 = arith.constant 0 : index
    %166 = vector.load %arg10[%c0_83, %c0_84] : memref<8x128xf32, #tpu.memory_space<vmem>>, vector<8x128xf32>
    %167 = arith.index_cast %164 : i32 to index
    %c0_85 = arith.constant 0 : index
    %168 = vector.load %arg7[%167, %c0_85] : memref<64x512xf32, #tpu.memory_space<vmem>>, vector<8x512xf32>
    %c0_86 = arith.constant 0 : index
    %c0_87 = arith.constant 0 : index
    %169 = vector.load %arg2[%c0_86, %c0_87] : memref<128x512xf32, #tpu.memory_space<vmem>>, vector<128x512xf32>
    %cst_88 = arith.constant dense<0.000000e+00> : vector<8x512xf32>
    %170 = tpu.matmul %165, %169, %cst_88 {dimension_numbers = #tpu.dot_dimension_numbers<[1], [0], [0], [1], [0, 0, 1, 1], [], []>} : vector<8x128xf32>, vector<128x512xf32>, vector<8x512xf32> -> vector<8x512xf32>
    %171 = arith.addf %168, %170 : vector<8x512xf32>
    %172 = vector.extract_strided_slice %171 {offsets = [0, 0], sizes = [8, 128], strides = [1, 1]} : vector<8x512xf32> to vector<8x128xf32>
    %173 = arith.negf %172 : vector<8x128xf32>
    %174 = math.exp %173 : vector<8x128xf32>
    %cst_89 = arith.constant 1.000000e+00 : f32
    %175 = vector.broadcast %cst_89 : f32 to vector<8x128xf32>
    %176 = arith.addf %175, %174 : vector<8x128xf32>
    %177 = arith.divf %175, %176 : vector<8x128xf32>
    %178 = vector.extract_strided_slice %171 {offsets = [0, 128], sizes = [8, 128], strides = [1, 1]} : vector<8x512xf32> to vector<8x128xf32>
    %179 = arith.negf %178 : vector<8x128xf32>
    %180 = math.exp %179 : vector<8x128xf32>
    %cst_90 = arith.constant 1.000000e+00 : f32
    %181 = vector.broadcast %cst_90 : f32 to vector<8x128xf32>
    %182 = arith.addf %181, %180 : vector<8x128xf32>
    %183 = arith.divf %181, %182 : vector<8x128xf32>
    %184 = vector.extract_strided_slice %171 {offsets = [0, 256], sizes = [8, 128], strides = [1, 1]} : vector<8x512xf32> to vector<8x128xf32>
    %185 = math.tanh %184 : vector<8x128xf32>
    %186 = vector.extract_strided_slice %171 {offsets = [0, 384], sizes = [8, 128], strides = [1, 1]} : vector<8x512xf32> to vector<8x128xf32>
    %187 = arith.negf %186 : vector<8x128xf32>
    %188 = math.exp %187 : vector<8x128xf32>
    %cst_91 = arith.constant 1.000000e+00 : f32
    %189 = vector.broadcast %cst_91 : f32 to vector<8x128xf32>
    %190 = arith.addf %189, %188 : vector<8x128xf32>
    %191 = arith.divf %189, %190 : vector<8x128xf32>
    %192 = arith.mulf %183, %166 : vector<8x128xf32>
    %193 = arith.mulf %177, %185 : vector<8x128xf32>
    %194 = arith.addf %192, %193 : vector<8x128xf32>
    %195 = math.tanh %194 : vector<8x128xf32>
    %196 = arith.mulf %191, %195 : vector<8x128xf32>
    %c0_92 = arith.constant 0 : index
    %c0_93 = arith.constant 0 : index
    %197 = vector.load %arg10[%c0_92, %c0_93] : memref<8x128xf32, #tpu.memory_space<vmem>>, vector<8x128xf32>
    tpu.vector_store %arg10[%c0_92, %c0_93], %194 {strides = array<i32>} : memref<8x128xf32, #tpu.memory_space<vmem>>, vector<8x128xf32>,
    %c0_94 = arith.constant 0 : index
    %c0_95 = arith.constant 0 : index
    %198 = vector.load %arg9[%c0_94, %c0_95] : memref<8x128xf32, #tpu.memory_space<vmem>>, vector<8x128xf32>
    tpu.vector_store %arg9[%c0_94, %c0_95], %196 {strides = array<i32>} : memref<8x128xf32, #tpu.memory_space<vmem>>, vector<8x128xf32>,
    %199 = arith.index_cast %164 : i32 to index
    %c0_96 = arith.constant 0 : index
    %200 = vector.load %arg8[%199, %c0_96] : memref<64x128xf32, #tpu.memory_space<vmem>>, vector<8x128xf32>
    tpu.vector_store %arg8[%199, %c0_96], %196 {strides = array<i32>} : memref<64x128xf32, #tpu.memory_space<vmem>>, vector<8x128xf32>,
    %c5_i32 = arith.constant 5 : i32
    %c8_i32_97 = arith.constant 8 : i32
    %201 = arith.muli %c5_i32, %c8_i32_97 : i32
    %202 = tpu.assume_multiple %201, 8 : i32
    %c0_98 = arith.constant 0 : index
    %c0_99 = arith.constant 0 : index
    %203 = vector.load %arg9[%c0_98, %c0_99] : memref<8x128xf32, #tpu.memory_space<vmem>>, vector<8x128xf32>
    %c0_100 = arith.constant 0 : index
    %c0_101 = arith.constant 0 : index
    %204 = vector.load %arg10[%c0_100, %c0_101] : memref<8x128xf32, #tpu.memory_space<vmem>>, vector<8x128xf32>
    %205 = arith.index_cast %202 : i32 to index
    %c0_102 = arith.constant 0 : index
    %206 = vector.load %arg7[%205, %c0_102] : memref<64x512xf32, #tpu.memory_space<vmem>>, vector<8x512xf32>
    %c0_103 = arith.constant 0 : index
    %c0_104 = arith.constant 0 : index
    %207 = vector.load %arg2[%c0_103, %c0_104] : memref<128x512xf32, #tpu.memory_space<vmem>>, vector<128x512xf32>
    %cst_105 = arith.constant dense<0.000000e+00> : vector<8x512xf32>
    %208 = tpu.matmul %203, %207, %cst_105 {dimension_numbers = #tpu.dot_dimension_numbers<[1], [0], [0], [1], [0, 0, 1, 1], [], []>} : vector<8x128xf32>, vector<128x512xf32>, vector<8x512xf32> -> vector<8x512xf32>
    %209 = arith.addf %206, %208 : vector<8x512xf32>
    %210 = vector.extract_strided_slice %209 {offsets = [0, 0], sizes = [8, 128], strides = [1, 1]} : vector<8x512xf32> to vector<8x128xf32>
    %211 = arith.negf %210 : vector<8x128xf32>
    %212 = math.exp %211 : vector<8x128xf32>
    %cst_106 = arith.constant 1.000000e+00 : f32
    %213 = vector.broadcast %cst_106 : f32 to vector<8x128xf32>
    %214 = arith.addf %213, %212 : vector<8x128xf32>
    %215 = arith.divf %213, %214 : vector<8x128xf32>
    %216 = vector.extract_strided_slice %209 {offsets = [0, 128], sizes = [8, 128], strides = [1, 1]} : vector<8x512xf32> to vector<8x128xf32>
    %217 = arith.negf %216 : vector<8x128xf32>
    %218 = math.exp %217 : vector<8x128xf32>
    %cst_107 = arith.constant 1.000000e+00 : f32
    %219 = vector.broadcast %cst_107 : f32 to vector<8x128xf32>
    %220 = arith.addf %219, %218 : vector<8x128xf32>
    %221 = arith.divf %219, %220 : vector<8x128xf32>
    %222 = vector.extract_strided_slice %209 {offsets = [0, 256], sizes = [8, 128], strides = [1, 1]} : vector<8x512xf32> to vector<8x128xf32>
    %223 = math.tanh %222 : vector<8x128xf32>
    %224 = vector.extract_strided_slice %209 {offsets = [0, 384], sizes = [8, 128], strides = [1, 1]} : vector<8x512xf32> to vector<8x128xf32>
    %225 = arith.negf %224 : vector<8x128xf32>
    %226 = math.exp %225 : vector<8x128xf32>
    %cst_108 = arith.constant 1.000000e+00 : f32
    %227 = vector.broadcast %cst_108 : f32 to vector<8x128xf32>
    %228 = arith.addf %227, %226 : vector<8x128xf32>
    %229 = arith.divf %227, %228 : vector<8x128xf32>
    %230 = arith.mulf %221, %204 : vector<8x128xf32>
    %231 = arith.mulf %215, %223 : vector<8x128xf32>
    %232 = arith.addf %230, %231 : vector<8x128xf32>
    %233 = math.tanh %232 : vector<8x128xf32>
    %234 = arith.mulf %229, %233 : vector<8x128xf32>
    %c0_109 = arith.constant 0 : index
    %c0_110 = arith.constant 0 : index
    %235 = vector.load %arg10[%c0_109, %c0_110] : memref<8x128xf32, #tpu.memory_space<vmem>>, vector<8x128xf32>
    tpu.vector_store %arg10[%c0_109, %c0_110], %232 {strides = array<i32>} : memref<8x128xf32, #tpu.memory_space<vmem>>, vector<8x128xf32>,
    %c0_111 = arith.constant 0 : index
    %c0_112 = arith.constant 0 : index
    %236 = vector.load %arg9[%c0_111, %c0_112] : memref<8x128xf32, #tpu.memory_space<vmem>>, vector<8x128xf32>
    tpu.vector_store %arg9[%c0_111, %c0_112], %234 {strides = array<i32>} : memref<8x128xf32, #tpu.memory_space<vmem>>, vector<8x128xf32>,
    %237 = arith.index_cast %202 : i32 to index
    %c0_113 = arith.constant 0 : index
    %238 = vector.load %arg8[%237, %c0_113] : memref<64x128xf32, #tpu.memory_space<vmem>>, vector<8x128xf32>
    tpu.vector_store %arg8[%237, %c0_113], %234 {strides = array<i32>} : memref<64x128xf32, #tpu.memory_space<vmem>>, vector<8x128xf32>,
    %c6_i32 = arith.constant 6 : i32
    %c8_i32_114 = arith.constant 8 : i32
    %239 = arith.muli %c6_i32, %c8_i32_114 : i32
    %240 = tpu.assume_multiple %239, 8 : i32
    %c0_115 = arith.constant 0 : index
    %c0_116 = arith.constant 0 : index
    %241 = vector.load %arg9[%c0_115, %c0_116] : memref<8x128xf32, #tpu.memory_space<vmem>>, vector<8x128xf32>
    %c0_117 = arith.constant 0 : index
    %c0_118 = arith.constant 0 : index
    %242 = vector.load %arg10[%c0_117, %c0_118] : memref<8x128xf32, #tpu.memory_space<vmem>>, vector<8x128xf32>
    %243 = arith.index_cast %240 : i32 to index
    %c0_119 = arith.constant 0 : index
    %244 = vector.load %arg7[%243, %c0_119] : memref<64x512xf32, #tpu.memory_space<vmem>>, vector<8x512xf32>
    %c0_120 = arith.constant 0 : index
    %c0_121 = arith.constant 0 : index
    %245 = vector.load %arg2[%c0_120, %c0_121] : memref<128x512xf32, #tpu.memory_space<vmem>>, vector<128x512xf32>
    %cst_122 = arith.constant dense<0.000000e+00> : vector<8x512xf32>
    %246 = tpu.matmul %241, %245, %cst_122 {dimension_numbers = #tpu.dot_dimension_numbers<[1], [0], [0], [1], [0, 0, 1, 1], [], []>} : vector<8x128xf32>, vector<128x512xf32>, vector<8x512xf32> -> vector<8x512xf32>
    %247 = arith.addf %244, %246 : vector<8x512xf32>
    %248 = vector.extract_strided_slice %247 {offsets = [0, 0], sizes = [8, 128], strides = [1, 1]} : vector<8x512xf32> to vector<8x128xf32>
    %249 = arith.negf %248 : vector<8x128xf32>
    %250 = math.exp %249 : vector<8x128xf32>
    %cst_123 = arith.constant 1.000000e+00 : f32
    %251 = vector.broadcast %cst_123 : f32 to vector<8x128xf32>
    %252 = arith.addf %251, %250 : vector<8x128xf32>
    %253 = arith.divf %251, %252 : vector<8x128xf32>
    %254 = vector.extract_strided_slice %247 {offsets = [0, 128], sizes = [8, 128], strides = [1, 1]} : vector<8x512xf32> to vector<8x128xf32>
    %255 = arith.negf %254 : vector<8x128xf32>
    %256 = math.exp %255 : vector<8x128xf32>
    %cst_124 = arith.constant 1.000000e+00 : f32
    %257 = vector.broadcast %cst_124 : f32 to vector<8x128xf32>
    %258 = arith.addf %257, %256 : vector<8x128xf32>
    %259 = arith.divf %257, %258 : vector<8x128xf32>
    %260 = vector.extract_strided_slice %247 {offsets = [0, 256], sizes = [8, 128], strides = [1, 1]} : vector<8x512xf32> to vector<8x128xf32>
    %261 = math.tanh %260 : vector<8x128xf32>
    %262 = vector.extract_strided_slice %247 {offsets = [0, 384], sizes = [8, 128], strides = [1, 1]} : vector<8x512xf32> to vector<8x128xf32>
    %263 = arith.negf %262 : vector<8x128xf32>
    %264 = math.exp %263 : vector<8x128xf32>
    %cst_125 = arith.constant 1.000000e+00 : f32
    %265 = vector.broadcast %cst_125 : f32 to vector<8x128xf32>
    %266 = arith.addf %265, %264 : vector<8x128xf32>
    %267 = arith.divf %265, %266 : vector<8x128xf32>
    %268 = arith.mulf %259, %242 : vector<8x128xf32>
    %269 = arith.mulf %253, %261 : vector<8x128xf32>
    %270 = arith.addf %268, %269 : vector<8x128xf32>
    %271 = math.tanh %270 : vector<8x128xf32>
    %272 = arith.mulf %267, %271 : vector<8x128xf32>
    %c0_126 = arith.constant 0 : index
    %c0_127 = arith.constant 0 : index
    %273 = vector.load %arg10[%c0_126, %c0_127] : memref<8x128xf32, #tpu.memory_space<vmem>>, vector<8x128xf32>
    tpu.vector_store %arg10[%c0_126, %c0_127], %270 {strides = array<i32>} : memref<8x128xf32, #tpu.memory_space<vmem>>, vector<8x128xf32>,
    %c0_128 = arith.constant 0 : index
    %c0_129 = arith.constant 0 : index
    %274 = vector.load %arg9[%c0_128, %c0_129] : memref<8x128xf32, #tpu.memory_space<vmem>>, vector<8x128xf32>
    tpu.vector_store %arg9[%c0_128, %c0_129], %272 {strides = array<i32>} : memref<8x128xf32, #tpu.memory_space<vmem>>, vector<8x128xf32>,
    %275 = arith.index_cast %240 : i32 to index
    %c0_130 = arith.constant 0 : index
    %276 = vector.load %arg8[%275, %c0_130] : memref<64x128xf32, #tpu.memory_space<vmem>>, vector<8x128xf32>
    tpu.vector_store %arg8[%275, %c0_130], %272 {strides = array<i32>} : memref<64x128xf32, #tpu.memory_space<vmem>>, vector<8x128xf32>,
    %c7_i32 = arith.constant 7 : i32
    %c8_i32_131 = arith.constant 8 : i32
    %277 = arith.muli %c7_i32, %c8_i32_131 : i32
    %278 = tpu.assume_multiple %277, 8 : i32
    %c0_132 = arith.constant 0 : index
    %c0_133 = arith.constant 0 : index
    %279 = vector.load %arg9[%c0_132, %c0_133] : memref<8x128xf32, #tpu.memory_space<vmem>>, vector<8x128xf32>
    %c0_134 = arith.constant 0 : index
    %c0_135 = arith.constant 0 : index
    %280 = vector.load %arg10[%c0_134, %c0_135] : memref<8x128xf32, #tpu.memory_space<vmem>>, vector<8x128xf32>
    %281 = arith.index_cast %278 : i32 to index
    %c0_136 = arith.constant 0 : index
    %282 = vector.load %arg7[%281, %c0_136] : memref<64x512xf32, #tpu.memory_space<vmem>>, vector<8x512xf32>
    %c0_137 = arith.constant 0 : index
    %c0_138 = arith.constant 0 : index
    %283 = vector.load %arg2[%c0_137, %c0_138] : memref<128x512xf32, #tpu.memory_space<vmem>>, vector<128x512xf32>
    %cst_139 = arith.constant dense<0.000000e+00> : vector<8x512xf32>
    %284 = tpu.matmul %279, %283, %cst_139 {dimension_numbers = #tpu.dot_dimension_numbers<[1], [0], [0], [1], [0, 0, 1, 1], [], []>} : vector<8x128xf32>, vector<128x512xf32>, vector<8x512xf32> -> vector<8x512xf32>
    %285 = arith.addf %282, %284 : vector<8x512xf32>
    %286 = vector.extract_strided_slice %285 {offsets = [0, 0], sizes = [8, 128], strides = [1, 1]} : vector<8x512xf32> to vector<8x128xf32>
    %287 = arith.negf %286 : vector<8x128xf32>
    %288 = math.exp %287 : vector<8x128xf32>
    %cst_140 = arith.constant 1.000000e+00 : f32
    %289 = vector.broadcast %cst_140 : f32 to vector<8x128xf32>
    %290 = arith.addf %289, %288 : vector<8x128xf32>
    %291 = arith.divf %289, %290 : vector<8x128xf32>
    %292 = vector.extract_strided_slice %285 {offsets = [0, 128], sizes = [8, 128], strides = [1, 1]} : vector<8x512xf32> to vector<8x128xf32>
    %293 = arith.negf %292 : vector<8x128xf32>
    %294 = math.exp %293 : vector<8x128xf32>
    %cst_141 = arith.constant 1.000000e+00 : f32
    %295 = vector.broadcast %cst_141 : f32 to vector<8x128xf32>
    %296 = arith.addf %295, %294 : vector<8x128xf32>
    %297 = arith.divf %295, %296 : vector<8x128xf32>
    %298 = vector.extract_strided_slice %285 {offsets = [0, 256], sizes = [8, 128], strides = [1, 1]} : vector<8x512xf32> to vector<8x128xf32>
    %299 = math.tanh %298 : vector<8x128xf32>
    %300 = vector.extract_strided_slice %285 {offsets = [0, 384], sizes = [8, 128], strides = [1, 1]} : vector<8x512xf32> to vector<8x128xf32>
    %301 = arith.negf %300 : vector<8x128xf32>
    %302 = math.exp %301 : vector<8x128xf32>
    %cst_142 = arith.constant 1.000000e+00 : f32
    %303 = vector.broadcast %cst_142 : f32 to vector<8x128xf32>
    %304 = arith.addf %303, %302 : vector<8x128xf32>
    %305 = arith.divf %303, %304 : vector<8x128xf32>
    %306 = arith.mulf %297, %280 : vector<8x128xf32>
    %307 = arith.mulf %291, %299 : vector<8x128xf32>
    %308 = arith.addf %306, %307 : vector<8x128xf32>
    %309 = math.tanh %308 : vector<8x128xf32>
    %310 = arith.mulf %305, %309 : vector<8x128xf32>
    %c0_143 = arith.constant 0 : index
    %c0_144 = arith.constant 0 : index
    %311 = vector.load %arg10[%c0_143, %c0_144] : memref<8x128xf32, #tpu.memory_space<vmem>>, vector<8x128xf32>
    tpu.vector_store %arg10[%c0_143, %c0_144], %308 {strides = array<i32>} : memref<8x128xf32, #tpu.memory_space<vmem>>, vector<8x128xf32>,
    %c0_145 = arith.constant 0 : index
    %c0_146 = arith.constant 0 : index
    %312 = vector.load %arg9[%c0_145, %c0_146] : memref<8x128xf32, #tpu.memory_space<vmem>>, vector<8x128xf32>
    tpu.vector_store %arg9[%c0_145, %c0_146], %310 {strides = array<i32>} : memref<8x128xf32, #tpu.memory_space<vmem>>, vector<8x128xf32>,
    %313 = arith.index_cast %278 : i32 to index
    %c0_147 = arith.constant 0 : index
    %314 = vector.load %arg8[%313, %c0_147] : memref<64x128xf32, #tpu.memory_space<vmem>>, vector<8x128xf32>
    tpu.vector_store %arg8[%313, %c0_147], %310 {strides = array<i32>} : memref<64x128xf32, #tpu.memory_space<vmem>>, vector<8x128xf32>,
    %c8_i32_148 = arith.constant 8 : i32
    %c0_149 = arith.constant 0 : index
    %c0_150 = arith.constant 0 : index
    %315 = vector.load %arg8[%c0_149, %c0_150] : memref<64x128xf32, #tpu.memory_space<vmem>>, vector<64x128xf32>
    %c0_151 = arith.constant 0 : index
    %c0_152 = arith.constant 0 : index
    %316 = vector.load %arg4[%c0_151, %c0_152] : memref<128x128xf32, #tpu.memory_space<vmem>>, vector<128x128xf32>
    %cst_153 = arith.constant dense<0.000000e+00> : vector<64x128xf32>
    %317 = tpu.matmul %315, %316, %cst_153 {dimension_numbers = #tpu.dot_dimension_numbers<[1], [0], [0], [1], [0, 0, 1, 1], [], []>} : vector<64x128xf32>, vector<128x128xf32>, vector<64x128xf32> -> vector<64x128xf32>
    %c0_154 = arith.constant 0 : index
    %c0_155 = arith.constant 0 : index
    %318 = vector.load %arg5[%c0_154, %c0_155] : memref<1x128xf32, #tpu.memory_space<vmem>>, vector<1x128xf32>
    %319 = vector.broadcast %318 : vector<1x128xf32> to vector<64x128xf32>
    %320 = arith.addf %317, %319 : vector<64x128xf32>
    %cst_156 = arith.constant dense<0xFF800000> : vector<64xf32>
    %321 = vector.multi_reduction <maximumf>, %320, %cst_156 [1] : vector<64x128xf32> to vector<64xf32>
    %322 = vector.shape_cast %321 : vector<64xf32> to vector<64x1xf32>
    %323 = vector.broadcast %322 : vector<64x1xf32> to vector<64x128xf32>
    %324 = arith.subf %320, %323 : vector<64x128xf32>
    %325 = math.exp %324 : vector<64x128xf32>
    %cst_157 = arith.constant dense<0.000000e+00> : vector<64xf32>
    %326 = vector.multi_reduction <add>, %325, %cst_157 [1] : vector<64x128xf32> to vector<64xf32>
    %327 = vector.shape_cast %326 : vector<64xf32> to vector<64x1xf32>
    %328 = tpu.reciprocal %327 {approx = true} : vector<64x1xf32> -> vector<64x1xf32>
    %329 = vector.broadcast %328 : vector<64x1xf32> to vector<64x128xf32>
    %330 = arith.mulf %325, %329 : vector<64x128xf32>
    %c0_158 = arith.constant 0 : index
    %c0_159 = arith.constant 0 : index
    %331 = vector.load %arg6[%c0_158, %c0_159] : memref<64x128xf32, #tpu.memory_space<vmem>>, vector<64x128xf32>
    tpu.vector_store %arg6[%c0_158, %c0_159], %330 {strides = array<i32>} : memref<64x128xf32, #tpu.memory_space<vmem>>, vector<64x128xf32>,
    return
  }
}

</mosaic_0001>

<bundles_post_ra>
// kernel: tpu_custom_call.1
= control target key start
LH: loop header
LB: loop body
LE: loop exit
PB: predicated region body
PF: predicated region fallthrough
CT: control target
= control target key end

     0   :  { %11 = vsyncpa [#allocation7], 0  ;;  %s4231_s0 = inlined_call_operand.vmem [shape: f32[64,16], index: 0, kind: input, shape index: {}]   ;;  %s4232_s1 = inlined_call_operand.vmem [shape: f32[16,512], index: 1, kind: input, shape index: {}]   ;;  %s4233_s2 = inlined_call_operand.hbm [shape: f32[128,512], index: 2, kind: input, shape index: {}]   ;;  %s4234_s3 = inlined_call_operand.vmem [shape: f32[1,512], index: 3, kind: input, shape index: {}]   ;;  %s4235_s4 = inlined_call_operand.hbm [shape: f32[128,128], index: 4, kind: input, shape index: {}]   ;;  %s4236_s5 = inlined_call_operand.vmem [shape: f32[1,128], index: 5, kind: input, shape index: {}]   ;;  %s4237_s6 = inlined_call_operand.hbm [shape: f32[64,128], index: 6, kind: output, shape index: {}]  }
   0x1   :  { %12 = vsyncpa [#allocation10], 0 }
   0x2   :  { %13 = vsyncpa [#allocation8], 0  ;;  %s3556_s21 = smov [#allocation6]   ;;  %s3484_s25 = scalar_lea.hbm %s4233_s2, 8192 }
   0x3   :  { %s23_s22 = sshll.u32 %s3556_s21, 4  ;;  %p3485_p0 = scmp.ne.s32.totalorder %s4233_s2, %s3484_s25  ;;  %s24_s22 = int_to_ptr.vmem [resolvable:$true] %s23_s22 }
   0x4   :  { %p3488_p1 = scmp.lt.u32.totalorder %s3484_s25, %s4233_s2 }
   0x6   :  { %p3490_p2 = pnand %p3488_p1, %p3485_p0 }
   0x8   :  { %3493 = shalt.err (!%p3490_p2)
}
   0x9   :  { %s3494_s30 = scalar_lea.vmem %s24_s22, 8192  ;;  %p3499_p4 = scmp.lt.s32.totalorder %s24_s22, %s24_s22 }
   0xa   :  { %p3495_p3 = scmp.ne.s32.totalorder %s24_s22, %s3494_s30  ;;  %p3500_p5 = scmp.lt.s32.totalorder %s3494_s30, %s3494_s30 }
   0xc   :  { %p3501_p6 = por %p3500_p5, %p3499_p4 }
   0xe   :  { %p3502_p7 = pnand %p3501_p6, %p3495_p3 }
  0x10   :  { %3505 = shalt.err (!%p3502_p7)
}
  0x11   :  { %s3557_s7 = smov 512   ;;  %s3558_s8 = smov 32  }
  0x12   :  { %29 = dma.hbm_to_vmem [thread:$0]  %s4233_s2, 8192, %s24_s22, [#allocation7], %s3557_s7, %s3557_s7, %s3558_s8  }
  0x13   :  { %s3559_s11 = smov [#allocation9]   ;;  %s3506_s15 = scalar_lea.hbm %s4235_s4, 2048 }
  0x14   :  { %s37_s12 = sshll.u32 %s3559_s11, 4  ;;  %p3507_p8 = scmp.ne.s32.totalorder %s4235_s4, %s3506_s15  ;;  %s38_s12 = int_to_ptr.vmem [resolvable:$true] %s37_s12 }
  0x15   :  { %p3510_p9 = scmp.lt.u32.totalorder %s3506_s15, %s4235_s4 }
  0x17   :  { %p3512_p10 = pnand %p3510_p9, %p3507_p8 }
  0x19   :  { %3515 = shalt.err (!%p3512_p10)
}
  0x1a   :  { %s3516_s20 = scalar_lea.vmem %s38_s12, 2048  ;;  %p3521_p12 = scmp.lt.s32.totalorder %s38_s12, %s38_s12 }
  0x1b   :  { %p3517_p11 = scmp.ne.s32.totalorder %s38_s12, %s3516_s20  ;;  %p3522_p13 = scmp.lt.s32.totalorder %s3516_s20, %s3516_s20 }
  0x1d   :  { %p3523_p0 = por %p3522_p13, %p3521_p12 }
  0x1f   :  { %p3524_p1 = pnand %p3523_p0, %p3517_p11 }
  0x21   :  { %3527 = shalt.err (!%p3524_p1)
}
  0x22   :  { %s3560_s2 = smov 128   ;;  %s3561_s21 = smov 8  }
  0x23   :  { %43 = dma.hbm_to_vmem [thread:$0]  %s4235_s4, 2048, %s38_s12, [#allocation10], %s3560_s2, %s3560_s2, %s3561_s21  }
  0x24   :  { %3550 = dma.done.wait [#allocation7], 8192  }
  0x25   :  { %3551 = vsyncadd [#allocation7], 4294959104 }
  0x26   :  { %3552 = dma.done.wait [#allocation10], 2048  }
  0x27   :  { %3553 = vsyncadd [#allocation10], 4294965248  ;;  %v3562_v0 = vmov 0.0   ;;  %v63_v1 = vld [vmem:[%s4232_s1 + $0x18] sm:$0xff]  ;;  %v62_v3 = vld [vmem:[%s4232_s1 + $0x10] sm:$0xff]  ;;  %vm90_vm0 = vcmask 130048  }
  0x28   :  { %292 = vmatprep.mubr.f32.mxu1 %v3562_v0  ;;  %179 = vmatprep.mubr.f32.mxu0 %v3562_v0  ;;  %v67_v2 = vld [vmem:[%s4232_s1 + $0x38] sm:$0xff]  ;;  %v66_v5 = vld [vmem:[%s4232_s1 + $0x30] sm:$0xff]  ;;  %v385_v6 = vld [vmem:[#allocation6 + $0x8] sm:$0xff] }
  0x29   :  { %v2704_v4 = vpack.c.bf16 %v67_v2, %v63_v1  ;;  %v2706_v7 = vpack.c.bf16 %v66_v5, %v62_v3  ;;  %v389_v8 = vld [vmem:[#allocation6 + $0x28] sm:$0xff]  ;;  %v384_v9 = vld [vmem:[#allocation6] sm:$0xff]  ;;  %v3670_v28 = vld [vmem:[%s4231_s0 + $0x10] sm:$0xff] }
  0x2a   :  { %v388_v10 = vld [vmem:[#allocation6 + $0x20] sm:$0xff]  ;;  %v3640_v11 = vpack.c.bf16 %v389_v8, %v385_v6  ;;  %v393_v12 = vld [vmem:[#allocation6 + $0x48] sm:$0xff]  ;;  %v3696_v41 = vld [vmem:[%s4231_s0 + $0x18] sm:$0xff] }
  0x2b   :  { %2705 = vmatprep.subr.bf16.mxu1 %v2704_v4  ;;  %v397_v13 = vld [vmem:[#allocation6 + $0x68] sm:$0xff]  ;;  %v52_v14 = vld [vmem:[%s4231_s0] sm:$0xff]  ;;  %v3645_v15 = vpack.c.bf16 %v388_v10, %v384_v9  ;;  %v58_v62 = vld [vmem:[%s4231_s0 + $0x30] sm:$0xff] }
  0x2c   :  { %2707 = vmatpush1.bf16.msra.mxu1 %v2706_v7  ;;  %v3648_v16 = vpack.c.bf16 %v397_v13, %v393_v12  ;;  %v392_v17 = vld [vmem:[#allocation6 + $0x40] sm:$0xff]  ;;  %v401_v19 = vld [vmem:[#allocation6 + $0x88] sm:$0xff]  ;;  %v387_v4 = vld [vmem:[#allocation6 + $0x18] sm:$0xff] }
  0x2d   :  { %2709 = vmatprep.subr.bf16.mxu1 %v3640_v11  ;;  %v396_v18 = vld [vmem:[#allocation6 + $0x60] sm:$0xff]  ;;  %v405_v20 = vld [vmem:[#allocation6 + $0xa8] sm:$0xff]  ;;  %v391_v5 = vld [vmem:[#allocation6 + $0x38] sm:$0xff] }
  0x2e   :  { %v3656_v21 = vld [vmem:[%s4231_s0 + $0x8] sm:$0xff]  ;;  %v3658_v22 = vpack.c.bf16 %v396_v18, %v392_v17  ;;  %v3661_v23 = vpack.c.bf16 %v405_v20, %v401_v19  ;;  %v400_v24 = vld [vmem:[#allocation6 + $0x80] sm:$0xff]  ;;  %v59_v6 = vld [vmem:[%s4231_s0 + $0x38] sm:$0xff]  ;;  %v3767_v8 = vpack.c.bf16 %v391_v5, %v387_v4  ;;  %v70_v5 = vlaneseq }
  0x2f   :  { %2599 = vmatmul.mubr.msk.f32.vlgmr.msra.gmra.mrb[0].mxu1 %vm90_vm0, %v52_v14  ;;  %v404_v25 = vld [vmem:[#allocation6 + $0xa0] sm:$0xff]  ;;  %v409_v26 = vld [vmem:[#allocation6 + $0xc8] sm:$0xff]  ;;  %v386_v9 = vld [vmem:[#allocation6 + $0x10] sm:$0xff] }
  0x30   :  { %2711 = vmatpush1.bf16.msra.mxu1 %v3645_v15  ;;  %298 = vmatprep.mubr.f32.mxu1 %v3562_v0  ;;  %v413_v27 = vld [vmem:[#allocation6 + $0xe8] sm:$0xff]  ;;  %v3672_v29 = vpack.c.bf16 %v404_v25, %v400_v24  ;;  %v408_v30 = vld [vmem:[#allocation6 + $0xc0] sm:$0xff]  ;;  %v390_v10 = vld [vmem:[#allocation6 + $0x30] sm:$0xff] }
  0x31   :  { %2713 = vmatprep.subr.bf16.mxu1 %v3648_v16  ;;  %v412_v31 = vld [vmem:[#allocation6 + $0xe0] sm:$0xff]  ;;  %v3675_v32 = vpack.c.bf16 %v413_v27, %v409_v26  ;;  %v61_v33 = vld [vmem:[%s4232_s1 + $0x8] sm:$0xff]  ;;  %v395_v12 = vld [vmem:[#allocation6 + $0x58] sm:$0xff] }
  0x32   :  { %v65_v34 = vld [vmem:[%s4232_s1 + $0x28] sm:$0xff]  ;;  %v60_v35 = vld [vmem:[%s4232_s1] sm:$0xff]  ;;  %v3698_v42 = vpack.c.bf16 %v412_v31, %v408_v30  ;;  %v399_v13 = vld [vmem:[#allocation6 + $0x78] sm:$0xff] }
  0x33   :  { %2600 = vmatmul.mubr.msk.f32.gmra.mrb[2].mxu1 %vm90_vm0, %v3656_v21  ;;  %v417_v36 = vld [vmem:[#allocation6 + $0x108] sm:$0xff]  ;;  %v2700_v38 = vpack.c.bf16 %v65_v34, %v61_v33  ;;  %v64_v39 = vld [vmem:[%s4232_s1 + $0x20] sm:$0xff]  ;;  %v3780_v17 = vpack.c.bf16 %v399_v13, %v395_v12  ;;  %v394_v18 = vld [vmem:[#allocation6 + $0x50] sm:$0xff] }
  0x34   :  { %2715 = vmatpush1.bf16.msra.mxu1 %v3658_v22  ;;  %304 = vmatprep.mubr.f32.mxu1 %v3562_v0  ;;  %v421_v37 = vld [vmem:[#allocation6 + $0x128] sm:$0xff]  ;;  %v2702_v40 = vpack.c.bf16 %v64_v39, %v60_v35  ;;  %v416_v44 = vld [vmem:[#allocation6 + $0x100] sm:$0xff]  ;;  %v398_v19 = vld [vmem:[#allocation6 + $0x70] sm:$0xff] }
  0x35   :  { %2717 = vmatprep.subr.bf16.mxu1 %v3661_v23  ;;  %v3701_v43 = vpack.c.bf16 %v421_v37, %v417_v36  ;;  %v420_v45 = vld [vmem:[#allocation6 + $0x120] sm:$0xff]  ;;  %2701 = vmatprep.subr.bf16.mxu0 %v2700_v38  ;;  %v425_v46 = vld [vmem:[#allocation6 + $0x148] sm:$0xff]  ;;  %v403_v20 = vld [vmem:[#allocation6 + $0x98] sm:$0xff]  ;;  %v3789_v24 = vpack.c.bf16 %v398_v19, %v394_v18 }
  0x36   :  { %v429_v47 = vld [vmem:[#allocation6 + $0x168] sm:$0xff]  ;;  %2703 = vmatpush1.bf16.msra.mxu0 %v2702_v40  ;;  %v3711_v48 = vld [vmem:[%s4231_s0 + $0x20] sm:$0xff]  ;;  %v3713_v49 = vpack.c.bf16 %v420_v45, %v416_v44  ;;  %v402_v26 = vld [vmem:[#allocation6 + $0x90] sm:$0xff] }
  0x37   :  { %2601 = vmatmul.mubr.msk.f32.gmra.mrb[4].mxu1 %vm90_vm0, %v3670_v28  ;;  %2773 = vmatprep.subr.bf16.mxu0 %v3640_v11  ;;  %v3716_v50 = vpack.c.bf16 %v429_v47, %v425_v46  ;;  %v424_v51 = vld [vmem:[#allocation6 + $0x140] sm:$0xff]  ;;  %v433_v53 = vld [vmem:[#allocation6 + $0x188] sm:$0xff]  ;;  %v406_v27 = vld [vmem:[#allocation6 + $0xb0] sm:$0xff] }
  0x38   :  { %2719 = vmatpush1.bf16.msra.mxu1 %v3672_v29  ;;  %310 = vmatprep.mubr.f32.mxu1 %v3562_v0  ;;  %v428_v52 = vld [vmem:[#allocation6 + $0x160] sm:$0xff]  ;;  %v437_v54 = vld [vmem:[#allocation6 + $0x1a8] sm:$0xff]  ;;  %v415_v30 = vld [vmem:[#allocation6 + $0xf8] sm:$0xff]  ;;  %v3801_v31 = vpack.c.bf16 %v406_v27, %v402_v26 }
  0x39   :  { %2721 = vmatprep.subr.bf16.mxu1 %v3675_v32  ;;  %2591 = vmatmul.mubr.msk.f32.vlgmr.msra.gmra.mrb[0].mxu0 %vm90_vm0, %v52_v14  ;;  %v3729_v55 = vld [vmem:[%s4231_s0 + $0x28] sm:$0xff]  ;;  %v3731_v56 = vpack.c.bf16 %v428_v52, %v424_v51  ;;  %v3734_v57 = vpack.c.bf16 %v437_v54, %v433_v53  ;;  %v432_v58 = vld [vmem:[#allocation6 + $0x180] sm:$0xff]  ;;  %v3777_v14 = vpack.c.bf16 %v390_v10, %v386_v9  ;;  %v410_v34 = vld [vmem:[#allocation6 + $0xd0] sm:$0xff]  ;;  %v71_v10 = vshrl.u32 %v70_v5, 7 }
  0x3a   :  { %2775 = vmatpush1.bf16.msra.mxu0 %v3645_v15  ;;  %185 = vmatprep.mubr.f32.mxu0 %v3562_v0  ;;  %v436_v59 = vld [vmem:[#allocation6 + $0x1a0] sm:$0xff]  ;;  %v441_v60 = vld [vmem:[#allocation6 + $0x1c8] sm:$0xff]  ;;  %v414_v35 = vld [vmem:[#allocation6 + $0xf0] sm:$0xff] }
  0x3b   :  { %2602 = vmatmul.mubr.msk.f32.gmra.mrb[6].mxu1 %vm90_vm0, %v3696_v41  ;;  %2777 = vmatprep.subr.bf16.mxu0 %v3648_v16  ;;  %v445_v61 = vld [vmem:[#allocation6 + $0x1e8] sm:$0xff]  ;;  %v3748_v63 = vpack.c.bf16 %v436_v59, %v432_v58  ;;  %v440_v2 = vld [vmem:[#allocation6 + $0x1c0] sm:$0xff]  ;;  %v419_v36 = vld [vmem:[#allocation6 + $0x118] sm:$0xff]  ;;  %v3811_v38 = vpack.c.bf16 %v414_v35, %v410_v34  ;;  %v72_v12 = vsub.s32 0, %v71_v10  ;;  %v76_v18 = vsub.s32 1, %v71_v10 }
  0x3c   :  { %2723 = vmatpush1.bf16.msra.mxu1 %v3698_v42  ;;  %316 = vmatprep.mubr.f32.mxu1 %v3562_v0  ;;  %v3751_v1 = vpack.c.bf16 %v445_v61, %v441_v60  ;;  %v444_v3 = vld [vmem:[#allocation6 + $0x1e0] sm:$0xff]  ;;  %v423_v37 = vld [vmem:[#allocation6 + $0x138] sm:$0xff]  ;;  %v418_v40 = vld [vmem:[#allocation6 + $0x110] sm:$0xff] }
  0x3d   :  { %2725 = vmatprep.subr.bf16.mxu1 %v3701_v43  ;;  %2592 = vmatmul.mubr.msk.f32.gmra.mrb[2].mxu0 %vm90_vm0, %v3656_v21  ;;  %v3764_v7 = vpack.c.bf16 %v444_v3, %v440_v2  ;;  %v407_v21 = vld [vmem:[#allocation6 + $0xb8] sm:$0xff]  ;;  %v3814_v39 = vpack.c.bf16 %v423_v37, %v419_v36  ;;  %v430_v51 = vld [vmem:[#allocation6 + $0x170] sm:$0xff]  ;;  %v68_v13 = vld [vmem:[%s4234_s3] sm:$0xf]  ;;  %v80_v37 = vsub.s32 2, %v71_v10 }
  0x3e   :  { %2779 = vmatpush1.bf16.msra.mxu0 %v3658_v22  ;;  %191 = vmatprep.mubr.f32.mxu0 %v3562_v0  ;;  %v3793_v25 = vpack.c.bf16 %v407_v21, %v403_v20  ;;  %v427_v44 = vld [vmem:[#allocation6 + $0x158] sm:$0xff]  ;;  %v438_v58 = vld [vmem:[#allocation6 + $0x1b0] sm:$0xff]  ;;  %v3865_v19 = vrot.slane %v68_v13, %v72_v12  ;;  %v3867_v20 = vrot.slane %v68_v13, %v76_v18 }
  0x3f   :  { %2603 = vmatmul.mubr.msk.f32.gmra.mrb[8].mxu1 %vm90_vm0, %v3711_v48  ;;  %2781 = vmatprep.subr.bf16.mxu0 %v3661_v23  ;;  %v431_v45 = vld [vmem:[#allocation6 + $0x178] sm:$0xff]  ;;  %v442_v2 = vld [vmem:[#allocation6 + $0x1d0] sm:$0xff] }
  0x40   :  { %2727 = vmatpush1.bf16.msra.mxu1 %v3713_v49  ;;  %322 = vmatprep.mubr.f32.mxu1 %v3562_v0  ;;  %v3824_v47 = vpack.c.bf16 %v431_v45, %v427_v44  ;;  %v435_v52 = vld [vmem:[#allocation6 + $0x198] sm:$0xff]  ;;  %v446_v3 = vld [vmem:[#allocation6 + $0x1f0] sm:$0xff] }
  0x41   :  { %2729 = vmatprep.subr.bf16.mxu1 %v3716_v50  ;;  %2593 = vmatmul.mubr.msk.f32.gmra.mrb[4].mxu0 %vm90_vm0, %v3670_v28  ;;  %v411_v28 = vld [vmem:[#allocation6 + $0xd8] sm:$0xff]  ;;  %v3839_v4 = vpack.c.bf16 %v446_v3, %v442_v2 }
  0x42   :  { %2783 = vmatpush1.bf16.msra.mxu0 %v3672_v29  ;;  %197 = vmatprep.mubr.f32.mxu0 %v3562_v0  ;;  %v3804_v33 = vpack.c.bf16 %v415_v30, %v411_v28  ;;  %v439_v53 = vld [vmem:[#allocation6 + $0x1b8] sm:$0xff] }
  0x43   :  { %2604 = vmatmul.mubr.msk.f32.gmra.mrb[10].mxu1 %vm90_vm0, %v3729_v55  ;;  %2785 = vmatprep.subr.bf16.mxu0 %v3675_v32  ;;  %v443_v59 = vld [vmem:[#allocation6 + $0x1d8] sm:$0xff] }
  0x44   :  { %2731 = vmatpush1.bf16.msra.mxu1 %v3731_v56  ;;  %328 = vmatprep.mubr.f32.mxu1 %v3562_v0  ;;  %v447_v60 = vld [vmem:[#allocation6 + $0x1f8] sm:$0xff] }
  0x45   :  { %2733 = vmatprep.subr.bf16.mxu1 %v3734_v57  ;;  %2594 = vmatmul.mubr.msk.f32.gmra.mrb[6].mxu0 %vm90_vm0, %v3696_v41  ;;  %v422_v41 = vld [vmem:[#allocation6 + $0x130] sm:$0xff] }
  0x46   :  { %2787 = vmatpush1.bf16.msra.mxu0 %v3698_v42  ;;  %203 = vmatprep.mubr.f32.mxu0 %v3562_v0  ;;  %v3821_v46 = vpack.c.bf16 %v422_v41, %v418_v40  ;;  %v84_v41 = vsub.s32 3, %v71_v10 }
  0x47   :  { %2605 = vmatmul.mubr.msk.f32.gmra.mrb[12].mxu1 %vm90_vm0, %v58_v62  ;;  %2789 = vmatprep.subr.bf16.mxu0 %v3701_v43 }
  0x48   :  { %2735 = vmatpush1.bf16.msra.mxu1 %v3748_v63  ;;  %334 = vmatprep.mubr.f32.mxu1 %v3562_v0 }
  0x49   :  { %2737 = vmatprep.subr.bf16.mxu1 %v3751_v1  ;;  %2595 = vmatmul.mubr.msk.f32.gmra.mrb[8].mxu0 %vm90_vm0, %v3711_v48  ;;  %v426_v48 = vld [vmem:[#allocation6 + $0x150] sm:$0xff] }
  0x4a   :  { %2791 = vmatpush1.bf16.msra.mxu0 %v3713_v49  ;;  %209 = vmatprep.mubr.f32.mxu0 %v3562_v0  ;;  %v3827_v54 = vpack.c.bf16 %v430_v51, %v426_v48  ;;  %v3871_v48 = vrot.slane %v68_v13, %v80_v37 }
  0x4b   :  { %2606 = vmatmul.mubr.msk.f32.gmra.mrb[14].mxu1 %vm90_vm0, %v59_v6  ;;  %2793 = vmatprep.subr.bf16.mxu0 %v3716_v50 }
  0x4c   :  { %2739 = vmatpush1.bf16.msra.mxu1 %v3764_v7  ;;  %512 = vmatprep.mubr.f32.mxu1 %v3562_v0 }
  0x4d   :  { %2741 = vmatprep.subr.bf16.mxu1 %v3767_v8  ;;  %2596 = vmatmul.mubr.msk.f32.gmra.mrb[10].mxu0 %vm90_vm0, %v3729_v55  ;;  %v3830_v55 = vpack.c.bf16 %v439_v53, %v435_v52  ;;  %v3873_v52 = vrot.slane %v68_v13, %v84_v41 }
  0x4e   :  { %2795 = vmatpush1.bf16.msra.mxu0 %v3731_v56  ;;  %215 = vmatprep.mubr.f32.mxu0 %v3562_v0 }
  0x4f   :  { %513 = vmatmul.mubr.f32.vlgmr.msra.gmra.mrb[16].mxu1 %v3562_v0  ;;  %2797 = vmatprep.subr.bf16.mxu0 %v3734_v57 }
  0x50   :  { %2743 = vmatpush1.bf16.msra.mxu1 %v3777_v14  ;;  %583 = vmatprep.mubr.f32.mxu1 %v3562_v0 }
  0x51   :  { %2745 = vmatprep.subr.bf16.mxu1 %v3780_v17  ;;  %2597 = vmatmul.mubr.msk.f32.gmra.mrb[12].mxu0 %vm90_vm0, %v58_v62  ;;  %v3836_v62 = vpack.c.bf16 %v447_v60, %v443_v59 }
  0x52   :  { %2799 = vmatpush1.bf16.msra.mxu0 %v3748_v63  ;;  %221 = vmatprep.mubr.f32.mxu0 %v3562_v0 }
  0x53   :  { %2801 = vmatprep.subr.bf16.mxu0 %v3751_v1 }
  0x54   :  { %2747 = vmatpush1.bf16.msra.mxu1 %v3789_v24 }
  0x55   :  { %2749 = vmatprep.subr.bf16.mxu1 %v3793_v25  ;;  %2598 = vmatmul.mubr.msk.f32.gmra.mrb[14].mxu0 %vm90_vm0, %v59_v6 }
  0x56   :  { %2803 = vmatpush1.bf16.msra.mxu0 %v3764_v7  ;;  %758 = vmatprep.mubr.f32.mxu0 %v3562_v0 }
  0x57   :  { %2837 = vmatprep.subr.bf16.mxu0 %v3640_v11  ;;  %v434_v11 = vld [vmem:[#allocation6 + $0x190] sm:$0xff] }
  0x58   :  { %2751 = vmatpush1.bf16.msra.mxu1 %v3801_v31  ;;  %v3833_v61 = vpack.c.bf16 %v438_v58, %v434_v11 }
  0x59   :  { %2753 = vmatprep.subr.bf16.mxu1 %v3804_v33 }
  0x5c   :  { %2755 = vmatpush1.bf16.msra.mxu1 %v3811_v38 }
  0x5d   :  { %2757 = vmatprep.subr.bf16.mxu1 %v3814_v39 }
  0x60   :  { %2759 = vmatpush1.bf16.msra.mxu1 %v3821_v46 }
  0x61   :  { %2761 = vmatprep.subr.bf16.mxu1 %v3824_v47 }
  0x64   :  { %2763 = vmatpush1.bf16.msra.mxu1 %v3827_v54 }
  0x65   :  { %2765 = vmatprep.subr.bf16.mxu1 %v3830_v55 }
  0x68   :  { %2767 = vmatpush1.bf16.msra.mxu1 %v3833_v61 }
  0x69   :  { %2769 = vmatprep.subr.bf16.mxu1 %v3836_v62 }
  0x6c   :  { %2771 = vmatpush1.bf16.msra.mxu1 %v3839_v4 }
  0x6d   :  { %2805 = vmatprep.subr.bf16.mxu1 %v3767_v8 }
  0x6f   :  { %584 = vmatmul.mubr.f32.vlgmr.msra.gmra.mrb[0].mxu1 %v3562_v0 }
  0x70   :  { %2807 = vmatpush1.bf16.msra.mxu1 %v3777_v14  ;;  %829 = vmatprep.mubr.f32.mxu1 %v3562_v0 }
  0x71   :  { %2809 = vmatprep.subr.bf16.mxu1 %v3780_v17 }
  0x74   :  { %2811 = vmatpush1.bf16.msra.mxu1 %v3789_v24 }
  0x75   :  { %2813 = vmatprep.subr.bf16.mxu1 %v3793_v25 }
  0x78   :  { %2815 = vmatpush1.bf16.msra.mxu1 %v3801_v31 }
  0x79   :  { %2817 = vmatprep.subr.bf16.mxu1 %v3804_v33 }
  0x7c   :  { %2819 = vmatpush1.bf16.msra.mxu1 %v3811_v38 }
  0x7d   :  { %2821 = vmatprep.subr.bf16.mxu1 %v3814_v39 }
  0x80   :  { %2823 = vmatpush1.bf16.msra.mxu1 %v3821_v46 }
  0x81   :  { %2825 = vmatprep.subr.bf16.mxu1 %v3824_v47 }
  0x84   :  { %2827 = vmatpush1.bf16.msra.mxu1 %v3827_v54 }
  0x85   :  { %2829 = vmatprep.subr.bf16.mxu1 %v3830_v55 }
  0x88   :  { %2831 = vmatpush1.bf16.msra.mxu1 %v3833_v61 }
  0x89   :  { %2833 = vmatprep.subr.bf16.mxu1 %v3836_v62 }
  0x8c   :  { %2835 = vmatpush1.bf16.msra.mxu1 %v3839_v4 }
  0x8d   :  { %2869 = vmatprep.subr.bf16.mxu1 %v3767_v8 }
 0x10c   :  { %v181_v6 = vpop.f32.mrb[0].mxu0 }
 0x10d   :  { %v183_v9 = vpop.f32.mrb[1].mxu0  ;;  %v182_v21 = vadd.f32 %v181_v6, %v3865_v19 }
 0x10e   :  { %v184_v26 = vadd.f32 %v183_v9, %v3867_v20 }
 0x122   :  { %v514_v27 = vpop.f32.mrb[16].mxu1 }
 0x123   :  { %v590_v28 = vadd.f32 %v514_v27, %v182_v21  ;;  %v516_v30 = vpop.f32.mrb[17].mxu1 }
 0x124   :  { %v591_v34 = vadd.f32 %v516_v30, %v184_v26 }
 0x125   :  { %v2607_v36 = vmul.f32 -1.442695, %v590_v28 }
 0x126   :  { %v2608_v35 = vmul.f32 -1.442695, %v591_v34 }
 0x128   :  { %3324 = vpow2.f32 %v2608_v35 }
 0x129   :  { %3326 = vpow2.f32 %v2607_v36 }
 0x132   :  { %v3325_v40 = vpop.eup %3324 }
 0x133   :  { %v3327_v44 = vpop.eup %3326  ;;  %v603_v45 = vadd.f32 1.0, %v3325_v40 }
 0x134   :  { %v597_v51 = vadd.f32 1.0, %v3327_v44 }
 0x135   :  { %3328 = vrcp.f32 %v603_v45  ;;  %v1140_v45 = vld [vmem:[#allocation6 + $0x80] sm:$0xff] }
 0x136   :  { %3330 = vrcp.f32 %v597_v51  ;;  %v1144_v51 = vld [vmem:[#allocation6 + $0xa0] sm:$0xff] }
 0x13f   :  { %v3329_v2 = vpop.eup %3328 }
 0x140   :  { %v3331_v3 = vpop.eup %3330  ;;  %v613_v6 = vmul.f32 0.0, %v3329_v2  ;;  %v1152_v2 = vld [vmem:[#allocation6 + $0xe0] sm:$0xff] }
 0x142   :  { %v585_v53 = vpop.f32.mrb[0].mxu1 }
 0x143   :  { %v3270_v11 = vadd.f32 %v585_v53, %v3871_v48  ;;  %v587_v58 = vpop.f32.mrb[1].mxu1  ;;  %v3960_v53 = vpack.c.bf16 %v1144_v51, %v1140_v45 }
 0x144   :  { %v3271_v59 = vadd.f32 %v587_v58, %v3873_v52  ;;  %v1153_v58 = vld [vmem:[#allocation6 + $0xe8] sm:$0xff] }
 0x145   :  { %3332 = vtanh.f32 %v3270_v11  ;;  %v1149_v11 = vld [vmem:[#allocation6 + $0xc8] sm:$0xff] }
 0x146   :  { %v2609_v60 = vmul.f32 -1.442695, %v3271_v59  ;;  %v3964_v59 = vpack.c.bf16 %v1153_v58, %v1149_v11 }
 0x148   :  { %3334 = vpow2.f32 %v2609_v60  ;;  %v1148_v60 = vld [vmem:[#allocation6 + $0xc0] sm:$0xff] }
 0x14f   :  { %v3333_v5 = vpop.eup %3332 }
 0x150   :  { %v614_v9 = vmul.f32 %v3333_v5, %v3331_v3  ;;  %v3966_v3 = vpack.c.bf16 %v1152_v2, %v1148_v60  ;;  %v1157_v5 = vld [vmem:[#allocation6 + $0x108] sm:$0xff] }
 0x152   :  { %v3335_v10 = vpop.eup %3334  ;;  %v3877_v12 = vadd.f32 %v614_v9, %v613_v6  ;;  %v1161_v6 = vld [vmem:[#allocation6 + $0x128] sm:$0xff] }
 0x153   :  { %v610_v13 = vadd.f32 1.0, %v3335_v10  ;;  %v3970_v9 = vpack.c.bf16 %v1161_v6, %v1157_v5  ;;  %v1156_v10 = vld [vmem:[#allocation6 + $0x100] sm:$0xff] }
 0x154   :  { %3336 = vtanh.f32 %v3877_v12 }
 0x155   :  { %3338 = vrcp.f32 %v610_v13 }
 0x15e   :  { %v3337_v18 = vpop.eup %3336 }
 0x15f   :  { %v3339_v21 = vpop.eup %3338 }
 0x160   :  { %v3880_v26 = vmul.f32 %v3339_v21, %v3337_v18  ;;  %v1165_v18 = vld [vmem:[#allocation6 + $0x148] sm:$0xff] }
 0x161   :  { %v1169_v21 = vld [vmem:[#allocation6 + $0x168] sm:$0xff] }
 0x162   :  { %759 = vmatmul.mubr.f32.vlgmr.msra.gmra.mrb[2].mxu0 %v3880_v26  ;;  %830 = vmatmul.mubr.f32.vlgmr.msra.gmra.mrb[2].mxu1 %v3880_v26 }
 0x163   :  { %2839 = vmatpush1.bf16.msra.mxu0 %v3645_v15  ;;  %2871 = vmatpush1.bf16.msra.mxu1 %v3777_v14 }
 0x164   :  { %2841 = vmatprep.subr.bf16.mxu0 %v3648_v16  ;;  %2873 = vmatprep.subr.bf16.mxu1 %v3780_v17 }
 0x165   :  { %1005 = vmatprep.mubr.f32.mxu0 %v3562_v0  ;;  %1076 = vmatprep.mubr.f32.mxu1 %v3562_v0 }
 0x167   :  { %2843 = vmatpush1.bf16.msra.mxu0 %v3658_v22  ;;  %2875 = vmatpush1.bf16.msra.mxu1 %v3789_v24 }
 0x168   :  { %2845 = vmatprep.subr.bf16.mxu0 %v3661_v23  ;;  %2877 = vmatprep.subr.bf16.mxu1 %v3793_v25 }
 0x16b   :  { %2847 = vmatpush1.bf16.msra.mxu0 %v3672_v29  ;;  %2879 = vmatpush1.bf16.msra.mxu1 %v3801_v31 }
 0x16c   :  { %2849 = vmatprep.subr.bf16.mxu0 %v3675_v32  ;;  %2881 = vmatprep.subr.bf16.mxu1 %v3804_v33 }
 0x16f   :  { %2851 = vmatpush1.bf16.msra.mxu0 %v3698_v42  ;;  %2883 = vmatpush1.bf16.msra.mxu1 %v3811_v38 }
 0x170   :  { %2853 = vmatprep.subr.bf16.mxu0 %v3701_v43  ;;  %2885 = vmatprep.subr.bf16.mxu1 %v3814_v39 }
 0x173   :  { %2855 = vmatpush1.bf16.msra.mxu0 %v3713_v49  ;;  %2887 = vmatpush1.bf16.msra.mxu1 %v3821_v46 }
 0x174   :  { %2857 = vmatprep.subr.bf16.mxu0 %v3716_v50  ;;  %2889 = vmatprep.subr.bf16.mxu1 %v3824_v47 }
 0x177   :  { %2859 = vmatpush1.bf16.msra.mxu0 %v3731_v56  ;;  %2891 = vmatpush1.bf16.msra.mxu1 %v3827_v54 }
 0x178   :  { %2861 = vmatprep.subr.bf16.mxu0 %v3734_v57  ;;  %2893 = vmatprep.subr.bf16.mxu1 %v3830_v55 }
 0x17b   :  { %2863 = vmatpush1.bf16.msra.mxu0 %v3748_v63  ;;  %2895 = vmatpush1.bf16.msra.mxu1 %v3833_v61 }
 0x17c   :  { %2865 = vmatprep.subr.bf16.mxu0 %v3751_v1  ;;  %2897 = vmatprep.subr.bf16.mxu1 %v3836_v62 }
 0x17f   :  { %2867 = vmatpush1.bf16.msra.mxu0 %v3764_v7  ;;  %2899 = vmatpush1.bf16.msra.mxu1 %v3839_v4 }
 0x180   :  { %2933 = vmatprep.subr.bf16.mxu1 %v3767_v8 }
 0x235   :  { %v760_v15 = vpop.f32.mrb[2].mxu0  ;;  %v831_v16 = vpop.f32.mrb[2].mxu1 }
 0x236   :  { %v3256_v22 = vadd.f32 %v760_v15, %v3865_v19  ;;  %v762_v23 = vpop.f32.mrb[3].mxu0  ;;  %v833_v29 = vpop.f32.mrb[3].mxu1  ;;  %v3272_v56 = vadd.f32 %v831_v16, %v3871_v48  ;;  %v1164_v15 = vld [vmem:[#allocation6 + $0x140] sm:$0xff]  ;;  %v3976_v16 = vpack.c.bf16 %v1169_v21, %v1165_v18  ;;  %v1373_v18 = vld [vmem:[#allocation6 + $0x10] sm:$0xff] }
 0x237   :  { %v3257_v32 = vadd.f32 %v762_v23, %v3867_v20  ;;  %v3273_v49 = vadd.f32 %v833_v29, %v3873_v52  ;;  %v1173_v23 = vld [vmem:[#allocation6 + $0x188] sm:$0xff]  ;;  %v1377_v21 = vld [vmem:[#allocation6 + $0x30] sm:$0xff] }
 0x238   :  { %v2610_v42 = vmul.f32 -1.442695, %v3256_v22  ;;  %v1168_v22 = vld [vmem:[#allocation6 + $0x160] sm:$0xff]  ;;  %v1177_v29 = vld [vmem:[#allocation6 + $0x1a8] sm:$0xff] }
 0x239   :  { %v2611_v43 = vmul.f32 -1.442695, %v3257_v32  ;;  %v2612_v50 = vmul.f32 -1.442695, %v3273_v49  ;;  %v3978_v32 = vpack.c.bf16 %v1168_v22, %v1164_v15  ;;  %v1176_v49 = vld [vmem:[#allocation6 + $0x1a0] sm:$0xff]  ;;  %v4027_v15 = vpack.c.bf16 %v1377_v21, %v1373_v18  ;;  %v1382_v22 = vld [vmem:[#allocation6 + $0x58] sm:$0xff] }
 0x23a   :  { %3340 = vpow2.f32 %v2610_v42  ;;  %v3980_v42 = vpack.c.bf16 %v1177_v29, %v1173_v23  ;;  %v1386_v23 = vld [vmem:[#allocation6 + $0x78] sm:$0xff] }
 0x23b   :  { %3342 = vpow2.f32 %v2611_v43  ;;  %v1172_v43 = vld [vmem:[#allocation6 + $0x180] sm:$0xff]  ;;  %v4031_v29 = vpack.c.bf16 %v1386_v23, %v1382_v22  ;;  %v1430_v18 = vld [vmem:[#allocation6 + $0x1d8] sm:$0xff] }
 0x23c   :  { %3344 = vpow2.f32 %v2612_v50  ;;  %v1181_v50 = vld [vmem:[#allocation6 + $0x1c8] sm:$0xff]  ;;  %v1434_v21 = vld [vmem:[#allocation6 + $0x1f8] sm:$0xff] }
 0x23d   :  { %3346 = vtanh.f32 %v3272_v56  ;;  %v1185_v56 = vld [vmem:[#allocation6 + $0x1e8] sm:$0xff]  ;;  %v4066_v23 = vpack.c.bf16 %v1434_v21, %v1430_v18 }
 0x244   :  { %v3341_v57 = vpop.eup %3340 }
 0x245   :  { %v3343_v63 = vpop.eup %3342  ;;  %v843_v1 = vadd.f32 1.0, %v3341_v57  ;;  %v3984_v57 = vpack.c.bf16 %v1176_v49, %v1172_v43  ;;  %v1381_v43 = vld [vmem:[#allocation6 + $0x50] sm:$0xff] }
 0x246   :  { %v849_v7 = vadd.f32 1.0, %v3343_v63  ;;  %v3345_v8 = vpop.eup %3344  ;;  %v3987_v63 = vpack.c.bf16 %v1185_v56, %v1181_v50  ;;  %v1385_v49 = vld [vmem:[#allocation6 + $0x70] sm:$0xff]  ;;  %v1390_v56 = vld [vmem:[#allocation6 + $0x98] sm:$0xff] }
 0x247   :  { %3348 = vrcp.f32 %v843_v1  ;;  %v3347_v27 = vpop.eup %3346  ;;  %v856_v35 = vadd.f32 1.0, %v3345_v8  ;;  %v1180_v1 = vld [vmem:[#allocation6 + $0x1c0] sm:$0xff]  ;;  %v4033_v50 = vpack.c.bf16 %v1385_v49, %v1381_v43  ;;  %v1429_v43 = vld [vmem:[#allocation6 + $0x1d0] sm:$0xff] }
 0x248   :  { %3350 = vrcp.f32 %v849_v7  ;;  %v1184_v7 = vld [vmem:[#allocation6 + $0x1e0] sm:$0xff]  ;;  %v1433_v49 = vld [vmem:[#allocation6 + $0x1f0] sm:$0xff] }
 0x249   :  { %3352 = vrcp.f32 %v856_v35  ;;  %v3990_v8 = vpack.c.bf16 %v1184_v7, %v1180_v1  ;;  %v1394_v1 = vld [vmem:[#allocation6 + $0xb8] sm:$0xff] }
 0x24a   :  { %v4037_v7 = vpack.c.bf16 %v1394_v1, %v1390_v56  ;;  %v4069_v56 = vpack.c.bf16 %v1433_v49, %v1429_v43 }
 0x251   :  { %v3349_v28 = vpop.eup %3348 }
 0x252   :  { %v3351_v30 = vpop.eup %3350  ;;  %v860_v34 = vmul.f32 %v3349_v28, %v3347_v27 }
 0x253   :  { %v859_v36 = vmul.f32 %v3351_v30, %v3877_v12  ;;  %v3353_v40 = vpop.eup %3352  ;;  %v1160_v12 = vld [vmem:[#allocation6 + $0x120] sm:$0xff] }
 0x254   :  { %v3972_v13 = vpack.c.bf16 %v1160_v12, %v1156_v10  ;;  %v1378_v10 = vld [vmem:[#allocation6 + $0x38] sm:$0xff] }
 0x255   :  { %v3922_v37 = vadd.f32 %v860_v34, %v859_v36 }
 0x257   :  { %3354 = vtanh.f32 %v3922_v37 }
 0x261   :  { %v3355_v41 = vpop.eup %3354 }
 0x262   :  { %v3925_v44 = vmul.f32 %v3355_v41, %v3353_v40 }
 0x264   :  { %1006 = vmatmul.mubr.f32.vlgmr.msra.gmra.mrb[4].mxu0 %v3925_v44  ;;  %1077 = vmatmul.mubr.f32.vlgmr.msra.gmra.mrb[4].mxu1 %v3925_v44 }
 0x265   :  { %2935 = vmatpush1.bf16.msra.mxu1 %v3777_v14  ;;  %1252 = vmatprep.mubr.f32.mxu0 %v3562_v0  ;;  %v1125_v14 = vld [vmem:[#allocation6 + $0x8] sm:$0xff] }
 0x266   :  { %2937 = vmatprep.subr.bf16.mxu1 %v3780_v17  ;;  %1323 = vmatprep.mubr.f32.mxu1 %v3562_v0  ;;  %v1129_v17 = vld [vmem:[#allocation6 + $0x28] sm:$0xff] }
 0x269   :  { %2939 = vmatpush1.bf16.msra.mxu1 %v3789_v24  ;;  %v3946_v24 = vpack.c.bf16 %v1129_v17, %v1125_v14 }
 0x26a   :  { %2941 = vmatprep.subr.bf16.mxu1 %v3793_v25  ;;  %v1124_v25 = vld [vmem:[#allocation6] sm:$0xff] }
 0x26b   :  { %2901 = vmatprep.subr.bf16.mxu0 %v3946_v24 }
 0x26d   :  { %2943 = vmatpush1.bf16.msra.mxu1 %v3801_v31  ;;  %v1128_v31 = vld [vmem:[#allocation6 + $0x20] sm:$0xff] }
 0x26e   :  { %2945 = vmatprep.subr.bf16.mxu1 %v3804_v33  ;;  %v3948_v33 = vpack.c.bf16 %v1128_v31, %v1124_v25 }
 0x270   :  { %2903 = vmatpush1.bf16.msra.mxu0 %v3948_v33 }
 0x271   :  { %2947 = vmatpush1.bf16.msra.mxu1 %v3811_v38  ;;  %v1133_v38 = vld [vmem:[#allocation6 + $0x48] sm:$0xff] }
 0x272   :  { %2949 = vmatprep.subr.bf16.mxu1 %v3814_v39  ;;  %v1137_v39 = vld [vmem:[#allocation6 + $0x68] sm:$0xff] }
 0x275   :  { %2951 = vmatpush1.bf16.msra.mxu1 %v3821_v46  ;;  %v3952_v46 = vpack.c.bf16 %v1137_v39, %v1133_v38 }
 0x276   :  { %2953 = vmatprep.subr.bf16.mxu1 %v3824_v47  ;;  %v1132_v47 = vld [vmem:[#allocation6 + $0x40] sm:$0xff] }
 0x277   :  { %2905 = vmatprep.subr.bf16.mxu0 %v3952_v46 }
 0x279   :  { %2955 = vmatpush1.bf16.msra.mxu1 %v3827_v54  ;;  %v1136_v54 = vld [vmem:[#allocation6 + $0x60] sm:$0xff] }
 0x27a   :  { %2957 = vmatprep.subr.bf16.mxu1 %v3830_v55  ;;  %v3954_v55 = vpack.c.bf16 %v1136_v54, %v1132_v47 }
 0x27c   :  { %2907 = vmatpush1.bf16.msra.mxu0 %v3954_v55 }
 0x27d   :  { %2959 = vmatpush1.bf16.msra.mxu1 %v3833_v61  ;;  %v1141_v61 = vld [vmem:[#allocation6 + $0x88] sm:$0xff] }
 0x27e   :  { %2961 = vmatprep.subr.bf16.mxu1 %v3836_v62  ;;  %v1145_v62 = vld [vmem:[#allocation6 + $0xa8] sm:$0xff] }
 0x281   :  { %2963 = vmatpush1.bf16.msra.mxu1 %v3839_v4  ;;  %v3958_v4 = vpack.c.bf16 %v1145_v62, %v1141_v61 }
 0x283   :  { %2909 = vmatprep.subr.bf16.mxu0 %v3958_v4 }
 0x284   :  { %2911 = vmatpush1.bf16.msra.mxu0 %v3960_v53 }
 0x285   :  { %2913 = vmatprep.subr.bf16.mxu0 %v3964_v59 }
 0x288   :  { %2915 = vmatpush1.bf16.msra.mxu0 %v3966_v3 }
 0x289   :  { %2917 = vmatprep.subr.bf16.mxu0 %v3970_v9 }
 0x28c   :  { %2919 = vmatpush1.bf16.msra.mxu0 %v3972_v13 }
 0x28d   :  { %2921 = vmatprep.subr.bf16.mxu0 %v3976_v16 }
 0x290   :  { %2923 = vmatpush1.bf16.msra.mxu0 %v3978_v32 }
 0x291   :  { %2925 = vmatprep.subr.bf16.mxu0 %v3980_v42 }
 0x294   :  { %2927 = vmatpush1.bf16.msra.mxu0 %v3984_v57 }
 0x295   :  { %2929 = vmatprep.subr.bf16.mxu0 %v3987_v63 }
 0x298   :  { %2931 = vmatpush1.bf16.msra.mxu0 %v3990_v8 }
 0x299   :  { %2965 = vmatprep.subr.bf16.mxu0 %v3946_v24 }
 0x337   :  { %v1007_v27 = vpop.f32.mrb[4].mxu0  ;;  %v1078_v28 = vpop.f32.mrb[4].mxu1 }
 0x338   :  { %v3258_v30 = vadd.f32 %v1007_v27, %v3865_v19  ;;  %v1009_v34 = vpop.f32.mrb[5].mxu0  ;;  %v1080_v35 = vpop.f32.mrb[5].mxu1  ;;  %v3274_v25 = vadd.f32 %v1078_v28, %v3871_v48  ;;  %v1389_v27 = vld [vmem:[#allocation6 + $0x90] sm:$0xff] }
 0x339   :  { %v3259_v36 = vadd.f32 %v1009_v34, %v3867_v20  ;;  %v3275_v14 = vadd.f32 %v1080_v35, %v3873_v52  ;;  %v1393_v28 = vld [vmem:[#allocation6 + $0xb0] sm:$0xff]  ;;  %v1398_v34 = vld [vmem:[#allocation6 + $0xd8] sm:$0xff] }
 0x33a   :  { %v2613_v40 = vmul.f32 -1.442695, %v3258_v30  ;;  %v4039_v30 = vpack.c.bf16 %v1393_v28, %v1389_v27  ;;  %v1402_v35 = vld [vmem:[#allocation6 + $0xf8] sm:$0xff] }
 0x33b   :  { %v2614_v41 = vmul.f32 -1.442695, %v3259_v36  ;;  %v2615_v17 = vmul.f32 -1.442695, %v3275_v14  ;;  %v4043_v36 = vpack.c.bf16 %v1402_v35, %v1398_v34 }
 0x33c   :  { %3356 = vpow2.f32 %v2613_v40  ;;  %v1397_v40 = vld [vmem:[#allocation6 + $0xd0] sm:$0xff] }
 0x33d   :  { %3358 = vpow2.f32 %v2614_v41  ;;  %v1401_v41 = vld [vmem:[#allocation6 + $0xf0] sm:$0xff] }
 0x33e   :  { %3360 = vpow2.f32 %v2615_v17  ;;  %v4045_v14 = vpack.c.bf16 %v1401_v41, %v1397_v40  ;;  %v1406_v17 = vld [vmem:[#allocation6 + $0x118] sm:$0xff] }
 0x33f   :  { %3362 = vtanh.f32 %v3274_v25  ;;  %v1410_v25 = vld [vmem:[#allocation6 + $0x138] sm:$0xff] }
 0x346   :  { %v3357_v31 = vpop.eup %3356 }
 0x347   :  { %v3359_v38 = vpop.eup %3358  ;;  %v1090_v39 = vadd.f32 1.0, %v3357_v31  ;;  %v4049_v31 = vpack.c.bf16 %v1410_v25, %v1406_v17 }
 0x348   :  { %v1096_v47 = vadd.f32 1.0, %v3359_v38  ;;  %v3361_v54 = vpop.eup %3360  ;;  %v1405_v38 = vld [vmem:[#allocation6 + $0x110] sm:$0xff] }
 0x349   :  { %3364 = vrcp.f32 %v1090_v39  ;;  %v3363_v61 = vpop.eup %3362  ;;  %v1103_v11 = vadd.f32 1.0, %v3361_v54  ;;  %v1409_v39 = vld [vmem:[#allocation6 + $0x130] sm:$0xff]  ;;  %v1414_v54 = vld [vmem:[#allocation6 + $0x158] sm:$0xff] }
 0x34a   :  { %3366 = vrcp.f32 %v1096_v47  ;;  %v4051_v47 = vpack.c.bf16 %v1409_v39, %v1405_v38 }
 0x34b   :  { %3368 = vrcp.f32 %v1103_v11  ;;  %v1422_v11 = vld [vmem:[#allocation6 + $0x198] sm:$0xff] }
 0x353   :  { %v3365_v62 = vpop.eup %3364 }
 0x354   :  { %v3367_v45 = vpop.eup %3366  ;;  %v1107_v51 = vmul.f32 %v3365_v62, %v3363_v61  ;;  %v1418_v61 = vld [vmem:[#allocation6 + $0x178] sm:$0xff]  ;;  %v1413_v62 = vld [vmem:[#allocation6 + $0x150] sm:$0xff] }
 0x355   :  { %v1106_v58 = vmul.f32 %v3367_v45, %v3922_v37  ;;  %v3369_v2 = vpop.eup %3368  ;;  %v1374_v37 = vld [vmem:[#allocation6 + $0x18] sm:$0xff]  ;;  %v4055_v45 = vpack.c.bf16 %v1418_v61, %v1414_v54 }
 0x356   :  { %v4025_v12 = vpack.c.bf16 %v1378_v10, %v1374_v37  ;;  %v1421_v37 = vld [vmem:[#allocation6 + $0x190] sm:$0xff] }
 0x357   :  { %v4000_v60 = vadd.f32 %v1107_v51, %v1106_v58  ;;  %v1417_v51 = vld [vmem:[#allocation6 + $0x170] sm:$0xff]  ;;  %v1426_v58 = vld [vmem:[#allocation6 + $0x1b8] sm:$0xff] }
 0x358   :  { %2997 = vmatprep.subr.bf16.mxu1 %v4025_v12  ;;  %v1425_v10 = vld [vmem:[#allocation6 + $0x1b0] sm:$0xff] }
 0x359   :  { %3370 = vtanh.f32 %v4000_v60  ;;  %v4063_v22 = vpack.c.bf16 %v1425_v10, %v1421_v37 }
 0x363   :  { %v3371_v5 = vpop.eup %3370 }
 0x364   :  { %v4003_v6 = vmul.f32 %v3371_v5, %v3369_v2  ;;  %v4057_v2 = vpack.c.bf16 %v1417_v51, %v1413_v62  ;;  %v4059_v5 = vpack.c.bf16 %v1426_v58, %v1422_v11 }
 0x366   :  { %1253 = vmatmul.mubr.f32.vlgmr.msra.gmra.mrb[6].mxu0 %v4003_v6  ;;  %1324 = vmatmul.mubr.f32.vlgmr.msra.gmra.mrb[6].mxu1 %v4003_v6 }
 0x367   :  { %2967 = vmatpush1.bf16.msra.mxu0 %v3948_v33  ;;  %1499 = vmatprep.mubr.f32.mxu0 %v3562_v0 }
 0x368   :  { %2969 = vmatprep.subr.bf16.mxu0 %v3952_v46  ;;  %1570 = vmatprep.mubr.f32.mxu1 %v3562_v0 }
 0x369   :  { %2999 = vmatpush1.bf16.msra.mxu1 %v4027_v15 }
 0x36a   :  { %3001 = vmatprep.subr.bf16.mxu1 %v4031_v29 }
 0x36b   :  { %2971 = vmatpush1.bf16.msra.mxu0 %v3954_v55 }
 0x36c   :  { %2973 = vmatprep.subr.bf16.mxu0 %v3958_v4 }
 0x36d   :  { %3003 = vmatpush1.bf16.msra.mxu1 %v4033_v50 }
 0x36e   :  { %3005 = vmatprep.subr.bf16.mxu1 %v4037_v7 }
 0x36f   :  { %2975 = vmatpush1.bf16.msra.mxu0 %v3960_v53 }
 0x370   :  { %2977 = vmatprep.subr.bf16.mxu0 %v3964_v59 }
 0x371   :  { %3007 = vmatpush1.bf16.msra.mxu1 %v4039_v30 }
 0x372   :  { %3009 = vmatprep.subr.bf16.mxu1 %v4043_v36 }
 0x373   :  { %2979 = vmatpush1.bf16.msra.mxu0 %v3966_v3 }
 0x374   :  { %2981 = vmatprep.subr.bf16.mxu0 %v3970_v9 }
 0x375   :  { %3011 = vmatpush1.bf16.msra.mxu1 %v4045_v14 }
 0x376   :  { %3013 = vmatprep.subr.bf16.mxu1 %v4049_v31 }
 0x377   :  { %2983 = vmatpush1.bf16.msra.mxu0 %v3972_v13 }
 0x378   :  { %2985 = vmatprep.subr.bf16.mxu0 %v3976_v16 }
 0x379   :  { %3015 = vmatpush1.bf16.msra.mxu1 %v4051_v47 }
 0x37a   :  { %3017 = vmatprep.subr.bf16.mxu1 %v4055_v45 }
 0x37b   :  { %2987 = vmatpush1.bf16.msra.mxu0 %v3978_v32 }
 0x37c   :  { %2989 = vmatprep.subr.bf16.mxu0 %v3980_v42 }
 0x37d   :  { %3019 = vmatpush1.bf16.msra.mxu1 %v4057_v2 }
 0x37e   :  { %3021 = vmatprep.subr.bf16.mxu1 %v4059_v5 }
 0x37f   :  { %2991 = vmatpush1.bf16.msra.mxu0 %v3984_v57 }
 0x380   :  { %2993 = vmatprep.subr.bf16.mxu0 %v3987_v63 }
 0x381   :  { %3023 = vmatpush1.bf16.msra.mxu1 %v4063_v22 }
 0x382   :  { %3025 = vmatprep.subr.bf16.mxu1 %v4066_v23 }
 0x383   :  { %2995 = vmatpush1.bf16.msra.mxu0 %v3990_v8 }
 0x384   :  { %3029 = vmatprep.subr.bf16.mxu0 %v3946_v24 }
 0x385   :  { %3027 = vmatpush1.bf16.msra.mxu1 %v4069_v56 }
 0x386   :  { %3061 = vmatprep.subr.bf16.mxu1 %v4025_v12 }
 0x439   :  { %v1254_v1 = vpop.f32.mrb[6].mxu0  ;;  %v1325_v27 = vpop.f32.mrb[6].mxu1 }
 0x43a   :  { %v3260_v28 = vadd.f32 %v1254_v1, %v3865_v19  ;;  %v1256_v34 = vpop.f32.mrb[7].mxu0  ;;  %v1327_v35 = vpop.f32.mrb[7].mxu1  ;;  %v3276_v39 = vadd.f32 %v1325_v27, %v3871_v48 }
 0x43b   :  { %v3261_v40 = vadd.f32 %v1256_v34, %v3867_v20  ;;  %v3277_v25 = vadd.f32 %v1327_v35, %v3873_v52 }
 0x43c   :  { %v2616_v41 = vmul.f32 -1.442695, %v3260_v28 }
 0x43d   :  { %v2617_v17 = vmul.f32 -1.442695, %v3261_v40  ;;  %v2618_v38 = vmul.f32 -1.442695, %v3277_v25 }
 0x43e   :  { %3372 = vpow2.f32 %v2616_v41 }
 0x43f   :  { %3374 = vpow2.f32 %v2617_v17 }
 0x440   :  { %3376 = vpow2.f32 %v2618_v38 }
 0x441   :  { %3378 = vtanh.f32 %v3276_v39 }
 0x448   :  { %v3373_v54 = vpop.eup %3372 }
 0x449   :  { %v3375_v61 = vpop.eup %3374  ;;  %v1337_v62 = vadd.f32 1.0, %v3373_v54 }
 0x44a   :  { %v1343_v51 = vadd.f32 1.0, %v3375_v61  ;;  %v3377_v11 = vpop.eup %3376 }
 0x44b   :  { %3380 = vrcp.f32 %v1337_v62  ;;  %v3379_v58 = vpop.eup %3378  ;;  %v1350_v21 = vadd.f32 1.0, %v3377_v11 }
 0x44c   :  { %3382 = vrcp.f32 %v1343_v51 }
 0x44d   :  { %3384 = vrcp.f32 %v1350_v21 }
 0x455   :  { %v3381_v37 = vpop.eup %3380 }
 0x456   :  { %v3383_v10 = vpop.eup %3382  ;;  %v1354_v18 = vmul.f32 %v3381_v37, %v3379_v58 }
 0x457   :  { %v1353_v43 = vmul.f32 %v3383_v10, %v4000_v60  ;;  %v3385_v1 = vpop.eup %3384 }
 0x459   :  { %v4079_v49 = vadd.f32 %v1354_v18, %v1353_v43 }
 0x45b   :  { %3386 = vtanh.f32 %v4079_v49 }
 0x465   :  { %v3387_v27 = vpop.eup %3386 }
 0x466   :  { %v4082_v28 = vmul.f32 %v3387_v27, %v3385_v1 }
 0x468   :  { %1500 = vmatmul.mubr.f32.vlgmr.msra.gmra.mrb[8].mxu0 %v4082_v28  ;;  %1571 = vmatmul.mubr.f32.vlgmr.msra.gmra.mrb[8].mxu1 %v4082_v28 }
 0x469   :  { %3031 = vmatpush1.bf16.msra.mxu0 %v3948_v33  ;;  %3063 = vmatpush1.bf16.msra.mxu1 %v4027_v15 }
 0x46a   :  { %3033 = vmatprep.subr.bf16.mxu0 %v3952_v46  ;;  %3065 = vmatprep.subr.bf16.mxu1 %v4031_v29 }
 0x46b   :  { %1746 = vmatprep.mubr.f32.mxu0 %v3562_v0  ;;  %1817 = vmatprep.mubr.f32.mxu1 %v3562_v0 }
 0x46d   :  { %3035 = vmatpush1.bf16.msra.mxu0 %v3954_v55  ;;  %3067 = vmatpush1.bf16.msra.mxu1 %v4033_v50 }
 0x46e   :  { %3037 = vmatprep.subr.bf16.mxu0 %v3958_v4  ;;  %3069 = vmatprep.subr.bf16.mxu1 %v4037_v7 }
 0x471   :  { %3039 = vmatpush1.bf16.msra.mxu0 %v3960_v53  ;;  %3071 = vmatpush1.bf16.msra.mxu1 %v4039_v30 }
 0x472   :  { %3041 = vmatprep.subr.bf16.mxu0 %v3964_v59  ;;  %3073 = vmatprep.subr.bf16.mxu1 %v4043_v36 }
 0x475   :  { %3043 = vmatpush1.bf16.msra.mxu0 %v3966_v3  ;;  %3075 = vmatpush1.bf16.msra.mxu1 %v4045_v14 }
 0x476   :  { %3045 = vmatprep.subr.bf16.mxu0 %v3970_v9  ;;  %3077 = vmatprep.subr.bf16.mxu1 %v4049_v31 }
 0x479   :  { %3047 = vmatpush1.bf16.msra.mxu0 %v3972_v13  ;;  %3079 = vmatpush1.bf16.msra.mxu1 %v4051_v47 }
 0x47a   :  { %3049 = vmatprep.subr.bf16.mxu0 %v3976_v16  ;;  %3081 = vmatprep.subr.bf16.mxu1 %v4055_v45 }
 0x47d   :  { %3051 = vmatpush1.bf16.msra.mxu0 %v3978_v32  ;;  %3083 = vmatpush1.bf16.msra.mxu1 %v4057_v2 }
 0x47e   :  { %3053 = vmatprep.subr.bf16.mxu0 %v3980_v42  ;;  %3085 = vmatprep.subr.bf16.mxu1 %v4059_v5 }
 0x481   :  { %3055 = vmatpush1.bf16.msra.mxu0 %v3984_v57  ;;  %3087 = vmatpush1.bf16.msra.mxu1 %v4063_v22 }
 0x482   :  { %3057 = vmatprep.subr.bf16.mxu0 %v3987_v63  ;;  %3089 = vmatprep.subr.bf16.mxu1 %v4066_v23 }
 0x485   :  { %3059 = vmatpush1.bf16.msra.mxu0 %v3990_v8  ;;  %3091 = vmatpush1.bf16.msra.mxu1 %v4069_v56 }
 0x486   :  { %3093 = vmatprep.subr.bf16.mxu0 %v3946_v24  ;;  %3125 = vmatprep.subr.bf16.mxu1 %v4025_v12 }
 0x53b   :  { %v1501_v60 = vpop.f32.mrb[8].mxu0  ;;  %v1572_v34 = vpop.f32.mrb[8].mxu1 }
 0x53c   :  { %v3262_v35 = vadd.f32 %v1501_v60, %v3865_v19  ;;  %v1503_v40 = vpop.f32.mrb[9].mxu0  ;;  %v1574_v41 = vpop.f32.mrb[9].mxu1  ;;  %v3278_v61 = vadd.f32 %v1572_v34, %v3871_v48 }
 0x53d   :  { %v3263_v17 = vadd.f32 %v1503_v40, %v3867_v20  ;;  %v3279_v39 = vadd.f32 %v1574_v41, %v3873_v52 }
 0x53e   :  { %v2619_v25 = vmul.f32 -1.442695, %v3262_v35 }
 0x53f   :  { %v2620_v38 = vmul.f32 -1.442695, %v3263_v17  ;;  %v2621_v54 = vmul.f32 -1.442695, %v3279_v39 }
 0x540   :  { %3388 = vpow2.f32 %v2619_v25 }
 0x541   :  { %3390 = vpow2.f32 %v2620_v38 }
 0x542   :  { %3392 = vpow2.f32 %v2621_v54 }
 0x543   :  { %3394 = vtanh.f32 %v3278_v61 }
 0x54a   :  { %v3389_v24 = vpop.eup %3388 }
 0x54b   :  { %v3391_v62 = vpop.eup %3390  ;;  %v1584_v51 = vadd.f32 1.0, %v3389_v24 }
 0x54c   :  { %v1590_v11 = vadd.f32 1.0, %v3391_v62  ;;  %v3393_v58 = vpop.eup %3392  ;;  %v2132_v62 = vld [vmem:[#allocation6 + $0xa0] sm:$0xff] }
 0x54d   :  { %3396 = vrcp.f32 %v1584_v51  ;;  %v3395_v37 = vpop.eup %3394  ;;  %v1597_v43 = vadd.f32 1.0, %v3393_v58  ;;  %v2141_v58 = vld [vmem:[#allocation6 + $0xe8] sm:$0xff] }
 0x54e   :  { %3398 = vrcp.f32 %v1590_v11  ;;  %v2137_v11 = vld [vmem:[#allocation6 + $0xc8] sm:$0xff] }
 0x54f   :  { %3400 = vrcp.f32 %v1597_v43  ;;  %v2145_v43 = vld [vmem:[#allocation6 + $0x108] sm:$0xff] }
 0x557   :  { %v3397_v10 = vpop.eup %3396 }
 0x558   :  { %v3399_v18 = vpop.eup %3398  ;;  %v1601_v21 = vmul.f32 %v3397_v10, %v3395_v37  ;;  %v3168_v37 = vpack.c.bf16 %v2141_v58, %v2137_v11  ;;  %v2136_v10 = vld [vmem:[#allocation6 + $0xc0] sm:$0xff] }
 0x559   :  { %v1600_v1 = vmul.f32 %v3399_v18, %v4079_v49  ;;  %v3401_v60 = vpop.eup %3400  ;;  %v2140_v18 = vld [vmem:[#allocation6 + $0xe0] sm:$0xff] }
 0x55b   :  { %v4125_v27 = vadd.f32 %v1601_v21, %v1600_v1  ;;  %v3170_v21 = vpack.c.bf16 %v2140_v18, %v2136_v10  ;;  %v2149_v1 = vld [vmem:[#allocation6 + $0x128] sm:$0xff]  ;;  %v2360_v10 = vld [vmem:[#allocation9 + $0x10] sm:$0xff]  ;;  %v2361_v18 = vld [vmem:[#allocation9 + $0x18] sm:$0xff] }
 0x55d   :  { %3402 = vtanh.f32 %v4125_v27 }
 0x567   :  { %v3403_v34 = vpop.eup %3402 }
 0x568   :  { %v4128_v35 = vmul.f32 %v3403_v34, %v3401_v60  ;;  %v2144_v60 = vld [vmem:[#allocation6 + $0x100] sm:$0xff] }
 0x569   :  { %v2148_v34 = vld [vmem:[#allocation6 + $0x120] sm:$0xff] }
 0x56a   :  { %1747 = vmatmul.mubr.f32.vlgmr.msra.gmra.mrb[10].mxu0 %v4128_v35  ;;  %1818 = vmatmul.mubr.f32.vlgmr.msra.gmra.mrb[10].mxu1 %v4128_v35 }
 0x56b   :  { %3095 = vmatpush1.bf16.msra.mxu0 %v3948_v33  ;;  %3127 = vmatpush1.bf16.msra.mxu1 %v4027_v15 }
 0x56c   :  { %3097 = vmatprep.subr.bf16.mxu0 %v3952_v46  ;;  %3129 = vmatprep.subr.bf16.mxu1 %v4031_v29 }
 0x56d   :  { %1993 = vmatprep.mubr.f32.mxu0 %v3562_v0  ;;  %2064 = vmatprep.mubr.f32.mxu1 %v3562_v0 }
 0x56f   :  { %3099 = vmatpush1.bf16.msra.mxu0 %v3954_v55  ;;  %3131 = vmatpush1.bf16.msra.mxu1 %v4033_v50 }
 0x570   :  { %3101 = vmatprep.subr.bf16.mxu0 %v3958_v4  ;;  %3133 = vmatprep.subr.bf16.mxu1 %v4037_v7 }
 0x573   :  { %3103 = vmatpush1.bf16.msra.mxu0 %v3960_v53  ;;  %3135 = vmatpush1.bf16.msra.mxu1 %v4039_v30 }
 0x574   :  { %3105 = vmatprep.subr.bf16.mxu0 %v3964_v59  ;;  %3137 = vmatprep.subr.bf16.mxu1 %v4043_v36 }
 0x577   :  { %3107 = vmatpush1.bf16.msra.mxu0 %v3966_v3  ;;  %3139 = vmatpush1.bf16.msra.mxu1 %v4045_v14 }
 0x578   :  { %3109 = vmatprep.subr.bf16.mxu0 %v3970_v9  ;;  %3141 = vmatprep.subr.bf16.mxu1 %v4049_v31 }
 0x57b   :  { %3111 = vmatpush1.bf16.msra.mxu0 %v3972_v13  ;;  %3143 = vmatpush1.bf16.msra.mxu1 %v4051_v47 }
 0x57c   :  { %3113 = vmatprep.subr.bf16.mxu0 %v3976_v16  ;;  %3145 = vmatprep.subr.bf16.mxu1 %v4055_v45 }
 0x57f   :  { %3115 = vmatpush1.bf16.msra.mxu0 %v3978_v32  ;;  %3147 = vmatpush1.bf16.msra.mxu1 %v4057_v2 }
 0x580   :  { %3117 = vmatprep.subr.bf16.mxu0 %v3980_v42  ;;  %3149 = vmatprep.subr.bf16.mxu1 %v4059_v5 }
 0x583   :  { %3119 = vmatpush1.bf16.msra.mxu0 %v3984_v57  ;;  %3151 = vmatpush1.bf16.msra.mxu1 %v4063_v22 }
 0x584   :  { %3121 = vmatprep.subr.bf16.mxu0 %v3987_v63  ;;  %3153 = vmatprep.subr.bf16.mxu1 %v4066_v23 }
 0x587   :  { %3123 = vmatpush1.bf16.msra.mxu0 %v3990_v8  ;;  %3155 = vmatpush1.bf16.msra.mxu1 %v4069_v56 }
 0x588   :  { %3189 = vmatprep.subr.bf16.mxu1 %v4025_v12 }
 0x63d   :  { %v1748_v33 = vpop.f32.mrb[10].mxu0  ;;  %v1819_v46 = vpop.f32.mrb[10].mxu1 }
 0x63e   :  { %v3264_v55 = vadd.f32 %v1748_v33, %v3865_v19  ;;  %v1750_v4 = vpop.f32.mrb[11].mxu0  ;;  %v1821_v53 = vpop.f32.mrb[11].mxu1  ;;  %v3280_v32 = vadd.f32 %v1819_v46, %v3871_v48  ;;  %v3174_v33 = vpack.c.bf16 %v2148_v34, %v2144_v60  ;;  %v2153_v46 = vld [vmem:[#allocation6 + $0x148] sm:$0xff]  ;;  %v2362_v60 = vld [vmem:[#allocation9 + $0x20] sm:$0xff] }
 0x63f   :  { %v3265_v59 = vadd.f32 %v1750_v4, %v3867_v20  ;;  %v3281_v13 = vadd.f32 %v1821_v53, %v3873_v52  ;;  %v2152_v4 = vld [vmem:[#allocation6 + $0x140] sm:$0xff]  ;;  %v2363_v34 = vld [vmem:[#allocation9 + $0x28] sm:$0xff] }
 0x640   :  { %v2622_v3 = vmul.f32 -1.442695, %v3264_v55  ;;  %v2157_v55 = vld [vmem:[#allocation6 + $0x168] sm:$0xff] }
 0x641   :  { %v2623_v9 = vmul.f32 -1.442695, %v3265_v59  ;;  %v2624_v16 = vmul.f32 -1.442695, %v3281_v13  ;;  %v3176_v53 = vpack.c.bf16 %v2157_v55, %v2153_v46  ;;  %v2156_v59 = vld [vmem:[#allocation6 + $0x160] sm:$0xff]  ;;  %v2365_v46 = vld [vmem:[#allocation9 + $0x38] sm:$0xff] }
 0x642   :  { %3404 = vpow2.f32 %v2622_v3  ;;  %v2161_v3 = vld [vmem:[#allocation6 + $0x188] sm:$0xff]  ;;  %v3178_v13 = vpack.c.bf16 %v2156_v59, %v2152_v4  ;;  %v2366_v4 = vld [vmem:[#allocation9 + $0x40] sm:$0xff] }
 0x643   :  { %3406 = vpow2.f32 %v2623_v9  ;;  %v2165_v9 = vld [vmem:[#allocation6 + $0x1a8] sm:$0xff] }
 0x644   :  { %3408 = vpow2.f32 %v2624_v16  ;;  %v3180_v16 = vpack.c.bf16 %v2165_v9, %v2161_v3  ;;  %v2368_v3 = vld [vmem:[#allocation9 + $0x50] sm:$0xff]  ;;  %v2369_v9 = vld [vmem:[#allocation9 + $0x58] sm:$0xff] }
 0x645   :  { %3410 = vtanh.f32 %v3280_v32  ;;  %v2160_v32 = vld [vmem:[#allocation6 + $0x180] sm:$0xff] }
 0x64c   :  { %v3405_v42 = vpop.eup %3404 }
 0x64d   :  { %v3407_v57 = vpop.eup %3406  ;;  %v1831_v63 = vadd.f32 1.0, %v3405_v42  ;;  %v2164_v42 = vld [vmem:[#allocation6 + $0x1a0] sm:$0xff] }
 0x64e   :  { %v1837_v8 = vadd.f32 1.0, %v3407_v57  ;;  %v3409_v12 = vpop.eup %3408  ;;  %v2169_v57 = vld [vmem:[#allocation6 + $0x1c8] sm:$0xff] }
 0x64f   :  { %3412 = vrcp.f32 %v1831_v63  ;;  %v3411_v49 = vpop.eup %3410  ;;  %v1844_v25 = vadd.f32 1.0, %v3409_v12  ;;  %v2173_v63 = vld [vmem:[#allocation6 + $0x1e8] sm:$0xff] }
 0x650   :  { %3414 = vrcp.f32 %v1837_v8  ;;  %v3182_v8 = vpack.c.bf16 %v2164_v42, %v2160_v32  ;;  %v3184_v12 = vpack.c.bf16 %v2173_v63, %v2169_v57  ;;  %v2371_v32 = vld [vmem:[#allocation9 + $0x68] sm:$0xff]  ;;  %v2372_v42 = vld [vmem:[#allocation9 + $0x70] sm:$0xff]  ;;  %v2373_v57 = vld [vmem:[#allocation9 + $0x78] sm:$0xff] }
 0x651   :  { %3416 = vrcp.f32 %v1844_v25  ;;  %v3248_v63 = vpack.c.bf16 %v2373_v57, %v2372_v42 }
 0x659   :  { %v3413_v40 = vpop.eup %3412 }
 0x65a   :  { %v3415_v41 = vpop.eup %3414  ;;  %v1848_v17 = vmul.f32 %v3413_v40, %v3411_v49  ;;  %v2168_v49 = vld [vmem:[#allocation6 + $0x1c0] sm:$0xff] }
 0x65b   :  { %v1847_v38 = vmul.f32 %v3415_v41, %v4125_v27  ;;  %v3417_v54 = vpop.eup %3416  ;;  %v3172_v27 = vpack.c.bf16 %v2149_v1, %v2145_v43  ;;  %v2172_v40 = vld [vmem:[#allocation6 + $0x1e0] sm:$0xff] }
 0x65c   :  { %v2358_v41 = vld [vmem:[#allocation9] sm:$0xff]  ;;  %v3186_v25 = vpack.c.bf16 %v2172_v40, %v2168_v49 }
 0x65d   :  { %v4170_v39 = vadd.f32 %v1848_v17, %v1847_v38  ;;  %v2359_v17 = vld [vmem:[#allocation9 + $0x8] sm:$0xff] }
 0x65e   :  { %v3220_v38 = vpack.c.bf16 %v2359_v17, %v2358_v41 }
 0x65f   :  { %3418 = vtanh.f32 %v4170_v39 }
 0x669   :  { %v3419_v61 = vpop.eup %3418 }
 0x66a   :  { %v4173_v24 = vmul.f32 %v3419_v61, %v3417_v54 }
 0x66c   :  { %1994 = vmatmul.mubr.f32.vlgmr.msra.gmra.mrb[12].mxu0 %v4173_v24  ;;  %2065 = vmatmul.mubr.f32.vlgmr.msra.gmra.mrb[12].mxu1 %v4173_v24 }
 0x66d   :  { %3191 = vmatpush1.bf16.msra.mxu1 %v4027_v15  ;;  %2240 = vmatprep.mubr.f32.mxu0 %v3562_v0  ;;  %v2117_v15 = vld [vmem:[#allocation6 + $0x28] sm:$0xff] }
 0x66e   :  { %3193 = vmatprep.subr.bf16.mxu1 %v4031_v29  ;;  %2311 = vmatprep.mubr.f32.mxu1 %v3562_v0  ;;  %v2113_v0 = vld [vmem:[#allocation6 + $0x8] sm:$0xff] }
 0x66f   :  { %v3156_v29 = vpack.c.bf16 %v2117_v15, %v2113_v0 }
 0x671   :  { %3195 = vmatpush1.bf16.msra.mxu1 %v4033_v50  ;;  %v2112_v50 = vld [vmem:[#allocation6] sm:$0xff]  ;;  %3157 = vmatprep.subr.bf16.mxu0 %v3156_v29 }
 0x672   :  { %3197 = vmatprep.subr.bf16.mxu1 %v4037_v7  ;;  %v2116_v7 = vld [vmem:[#allocation6 + $0x20] sm:$0xff] }
 0x675   :  { %3199 = vmatpush1.bf16.msra.mxu1 %v4039_v30  ;;  %v3158_v30 = vpack.c.bf16 %v2116_v7, %v2112_v50 }
 0x676   :  { %3201 = vmatprep.subr.bf16.mxu1 %v4043_v36  ;;  %v2121_v36 = vld [vmem:[#allocation6 + $0x48] sm:$0xff] }
 0x677   :  { %3159 = vmatpush1.bf16.msra.mxu0 %v3158_v30 }
 0x679   :  { %3203 = vmatpush1.bf16.msra.mxu1 %v4045_v14  ;;  %v2125_v14 = vld [vmem:[#allocation6 + $0x68] sm:$0xff] }
 0x67a   :  { %3205 = vmatprep.subr.bf16.mxu1 %v4049_v31  ;;  %v3160_v31 = vpack.c.bf16 %v2125_v14, %v2121_v36 }
 0x67c   :  { %3161 = vmatprep.subr.bf16.mxu0 %v3160_v31 }
 0x67d   :  { %3207 = vmatpush1.bf16.msra.mxu1 %v4051_v47  ;;  %v2120_v47 = vld [vmem:[#allocation6 + $0x40] sm:$0xff] }
 0x67e   :  { %3209 = vmatprep.subr.bf16.mxu1 %v4055_v45  ;;  %v2124_v45 = vld [vmem:[#allocation6 + $0x60] sm:$0xff] }
 0x681   :  { %3211 = vmatpush1.bf16.msra.mxu1 %v4057_v2  ;;  %v3162_v2 = vpack.c.bf16 %v2124_v45, %v2120_v47 }
 0x682   :  { %3213 = vmatprep.subr.bf16.mxu1 %v4059_v5  ;;  %v2129_v5 = vld [vmem:[#allocation6 + $0x88] sm:$0xff] }
 0x683   :  { %3163 = vmatpush1.bf16.msra.mxu0 %v3162_v2 }
 0x685   :  { %3215 = vmatpush1.bf16.msra.mxu1 %v4063_v22  ;;  %v2133_v22 = vld [vmem:[#allocation6 + $0xa8] sm:$0xff] }
 0x686   :  { %3217 = vmatprep.subr.bf16.mxu1 %v4066_v23  ;;  %v3164_v23 = vpack.c.bf16 %v2133_v22, %v2129_v5 }
 0x688   :  { %3165 = vmatprep.subr.bf16.mxu0 %v3164_v23 }
 0x689   :  { %3219 = vmatpush1.bf16.msra.mxu1 %v4069_v56  ;;  %v2128_v56 = vld [vmem:[#allocation6 + $0x80] sm:$0xff] }
 0x68a   :  { %v3166_v51 = vpack.c.bf16 %v2132_v62, %v2128_v56 }
 0x68c   :  { %3167 = vmatpush1.bf16.msra.mxu0 %v3166_v51 }
 0x68d   :  { %3169 = vmatprep.subr.bf16.mxu0 %v3168_v37 }
 0x690   :  { %3171 = vmatpush1.bf16.msra.mxu0 %v3170_v21 }
 0x691   :  { %3173 = vmatprep.subr.bf16.mxu0 %v3172_v27  ;;  %v3224_v27 = vpack.c.bf16 %v2361_v18, %v2360_v10 }
 0x694   :  { %3175 = vmatpush1.bf16.msra.mxu0 %v3174_v33  ;;  %v2364_v33 = vld [vmem:[#allocation9 + $0x30] sm:$0xff] }
 0x695   :  { %3177 = vmatprep.subr.bf16.mxu0 %v3176_v53  ;;  %v3232_v55 = vpack.c.bf16 %v2365_v46, %v2364_v33  ;;  %v2367_v53 = vld [vmem:[#allocation9 + $0x48] sm:$0xff] }
 0x696   :  { %v3236_v59 = vpack.c.bf16 %v2367_v53, %v2366_v4 }
 0x698   :  { %3179 = vmatpush1.bf16.msra.mxu0 %v3178_v13  ;;  %v3240_v13 = vpack.c.bf16 %v2369_v9, %v2368_v3 }
 0x699   :  { %3181 = vmatprep.subr.bf16.mxu0 %v3180_v16  ;;  %v2370_v16 = vld [vmem:[#allocation9 + $0x60] sm:$0xff] }
 0x69c   :  { %3183 = vmatpush1.bf16.msra.mxu0 %v3182_v8 }
 0x69d   :  { %3185 = vmatprep.subr.bf16.mxu0 %v3184_v12 }
 0x6a0   :  { %3187 = vmatpush1.bf16.msra.mxu0 %v3186_v25 }
 0x6a1   :  { %3221 = vmatprep.subr.bf16.mxu0 %v3220_v38 }
 0x73f   :  { %v1995_v54 = vpop.f32.mrb[12].mxu0  ;;  %v2066_v61 = vpop.f32.mrb[12].mxu1 }
 0x740   :  { %v3266_v0 = vadd.f32 %v1995_v54, %v3865_v19  ;;  %v1997_v15 = vpop.f32.mrb[13].mxu0  ;;  %v2068_v29 = vpop.f32.mrb[13].mxu1  ;;  %v3282_v31 = vadd.f32 %v2066_v61, %v3871_v48 }
 0x741   :  { %v3267_v50 = vadd.f32 %v1997_v15, %v3867_v20  ;;  %v3283_v36 = vadd.f32 %v2068_v29, %v3873_v52 }
 0x742   :  { %v2625_v7 = vmul.f32 -1.442695, %v3266_v0 }
 0x743   :  { %v2626_v30 = vmul.f32 -1.442695, %v3267_v50  ;;  %v2627_v14 = vmul.f32 -1.442695, %v3283_v36 }
 0x744   :  { %3420 = vpow2.f32 %v2625_v7 }
 0x745   :  { %3422 = vpow2.f32 %v2626_v30 }
 0x746   :  { %3424 = vpow2.f32 %v2627_v14 }
 0x747   :  { %3426 = vtanh.f32 %v3282_v31 }
 0x74e   :  { %v3421_v47 = vpop.eup %3420 }
 0x74f   :  { %v3423_v45 = vpop.eup %3422  ;;  %v2078_v2 = vadd.f32 1.0, %v3421_v47 }
 0x750   :  { %v2084_v5 = vadd.f32 1.0, %v3423_v45  ;;  %v3425_v22 = vpop.eup %3424 }
 0x751   :  { %3428 = vrcp.f32 %v2078_v2  ;;  %v3427_v23 = vpop.eup %3426  ;;  %v2091_v11 = vadd.f32 1.0, %v3425_v22 }
 0x752   :  { %3430 = vrcp.f32 %v2084_v5 }
 0x753   :  { %3432 = vrcp.f32 %v2091_v11 }
 0x75b   :  { %v3429_v56 = vpop.eup %3428 }
 0x75c   :  { %v3431_v62 = vpop.eup %3430  ;;  %v2095_v51 = vmul.f32 %v3429_v56, %v3427_v23 }
 0x75d   :  { %v2094_v58 = vmul.f32 %v3431_v62, %v4170_v39  ;;  %v3433_v21 = vpop.eup %3432  ;;  %v3228_v39 = vpack.c.bf16 %v2363_v34, %v2362_v60 }
 0x75f   :  { %v4199_v37 = vadd.f32 %v2095_v51, %v2094_v58 }
 0x761   :  { %3434 = vtanh.f32 %v4199_v37 }
 0x76b   :  { %v3435_v43 = vpop.eup %3434 }
 0x76c   :  { %v2098_v1 = vmul.f32 %v3435_v43, %v3433_v21 }
 0x76e   :  { %2241 = vmatmul.mubr.f32.vlgmr.msra.gmra.mrb[14].mxu0 %v2098_v1  ;;  %2312 = vmatmul.mubr.f32.vlgmr.msra.gmra.mrb[14].mxu1 %v2098_v1 }
 0x76f   :  { %3223 = vmatpush3.bf16.msra.mxu0 %v3220_v38  ;;  %2688 = vmatprep.mubr.f32.mxu0 %v3880_v26  ;;  %v3244_v26 = vpack.c.bf16 %v2371_v32, %v2370_v16 }
 0x770   :  { %3225 = vmatprep.subr.bf16.mxu0 %v3224_v27 }
 0x773   :  { %3227 = vmatpush3.bf16.msra.mxu0 %v3224_v27 }
 0x774   :  { %3229 = vmatprep.subr.bf16.mxu0 %v3228_v39 }
 0x777   :  { %3231 = vmatpush3.bf16.msra.mxu0 %v3228_v39 }
 0x778   :  { %3233 = vmatprep.subr.bf16.mxu0 %v3232_v55 }
 0x77b   :  { %3235 = vmatpush3.bf16.msra.mxu0 %v3232_v55 }
 0x77c   :  { %3237 = vmatprep.subr.bf16.mxu0 %v3236_v59 }
 0x77f   :  { %3239 = vmatpush3.bf16.msra.mxu0 %v3236_v59 }
 0x780   :  { %3241 = vmatprep.subr.bf16.mxu0 %v3240_v13 }
 0x783   :  { %3243 = vmatpush3.bf16.msra.mxu0 %v3240_v13 }
 0x784   :  { %3245 = vmatprep.subr.bf16.mxu0 %v3244_v26 }
 0x787   :  { %3247 = vmatpush3.bf16.msra.mxu0 %v3244_v26 }
 0x788   :  { %3249 = vmatprep.subr.bf16.mxu0 %v3248_v63 }
 0x78b   :  { %3251 = vmatpush3.bf16.msra.mxu0 %v3248_v63 }
 0x78e   :  { %2689 = vmatmul.mubr.f32.vlgmr.msra.gmra.mrb[16].mxu0 %v3925_v44 }
 0x78f   :  { %2691 = vmatprep.mubr.f32.mxu0 %v4003_v6 }
 0x792   :  { %2692 = vmatmul.mubr.f32.gmra.mrb[18].mxu0 %v4082_v28 }
 0x793   :  { %2694 = vmatprep.mubr.f32.mxu0 %v4128_v35 }
 0x796   :  { %2695 = vmatmul.mubr.f32.gmra.mrb[20].mxu0 %v4173_v24 }
 0x797   :  { %2697 = vmatprep.mubr.f32.mxu0 %v2098_v1 }
 0x841   :  { %v2242_v8 = vpop.f32.mrb[14].mxu0  ;;  %v2313_v12 = vpop.f32.mrb[14].mxu1 }
 0x842   :  { %v3268_v49 = vadd.f32 %v2242_v8, %v3865_v19  ;;  %v2244_v40 = vpop.f32.mrb[15].mxu0  ;;  %v2315_v41 = vpop.f32.mrb[15].mxu1  ;;  %v3284_v28 = vadd.f32 %v2313_v12, %v3871_v48  ;;  %v2631_v48 = vld [vmem:[%s4236_s5] ss:$0 sm:$0xff]  ;;  %s3563_s5 = smov [#allocation11]  }
 0x843   :  { %v3269_v17 = vadd.f32 %v2244_v40, %v3867_v20  ;;  %v3285_v44 = vadd.f32 %v2315_v41, %v3873_v52  ;;  %s2571_s8 = sshll.u32 %s3563_s5, 4  ;;  %s2572_s8 = int_to_ptr.vmem [resolvable:$true] %s2571_s8 }
 0x844   :  { %v2628_v25 = vmul.f32 -1.442695, %v3268_v49  ;;  %s3528_s9 = scalar_lea.vmem %s2572_s8, 1024  ;;  %p3533_p3 = scmp.lt.s32.totalorder %s2572_s8, %s2572_s8 }
 0x845   :  { %v2629_v38 = vmul.f32 -1.442695, %v3269_v17  ;;  %v2630_v6 = vmul.f32 -1.442695, %v3285_v44  ;;  %p3529_p2 = scmp.ne.s32.totalorder %s2572_s8, %s3528_s9  ;;  %p3534_p4 = scmp.lt.s32.totalorder %s3528_s9, %s3528_s9 }
 0x846   :  { %3436 = vpow2.f32 %v2628_v25 }
 0x847   :  { %3438 = vpow2.f32 %v2629_v38  ;;  %p3535_p5 = por %p3534_p4, %p3533_p3 }
 0x848   :  { %3440 = vpow2.f32 %v2630_v6 }
 0x849   :  { %3442 = vtanh.f32 %v3284_v28  ;;  %p3536_p6 = pnand %p3535_p5, %p3529_p2 }
 0x850   :  { %v3437_v35 = vpop.eup %3436 }
 0x851   :  { %v3439_v24 = vpop.eup %3438  ;;  %v2325_v54 = vadd.f32 1.0, %v3437_v35 }
 0x852   :  { %v2331_v61 = vadd.f32 1.0, %v3439_v24  ;;  %v3441_v19 = vpop.eup %3440 }
 0x853   :  { %3444 = vrcp.f32 %v2325_v54  ;;  %v3443_v0 = vpop.eup %3442  ;;  %v2338_v50 = vadd.f32 1.0, %v3441_v19 }
 0x854   :  { %3446 = vrcp.f32 %v2331_v61 }
 0x855   :  { %3448 = vrcp.f32 %v2338_v50 }
 0x85d   :  { %v3445_v20 = vpop.eup %3444 }
 0x85e   :  { %v3447_v15 = vpop.eup %3446  ;;  %v2342_v29 = vmul.f32 %v3445_v20, %v3443_v0 }
 0x85f   :  { %v2341_v7 = vmul.f32 %v3447_v15, %v4199_v37  ;;  %v3449_v62 = vpop.eup %3448 }
 0x861   :  { %v2690_v52 = vpop.f32.mrb[16].mxu0  ;;  %v2343_v30 = vadd.f32 %v2342_v29, %v2341_v7 }
 0x862   :  { %v2453_v36 = vadd.f32 %v2690_v52, %v2631_v48  ;;  %v2447_v14 = vpop.f32.mrb[17].mxu0 }
 0x863   :  { %3450 = vtanh.f32 %v2343_v30  ;;  %v2448_v47 = vadd.f32 %v2631_v48, %v2447_v14 }
 0x864   :  { %2488 = vmax.xlane.f32.xlu0 %v2453_v36 }
 0x865   :  { %v2693_v31 = vpop.f32.mrb[18].mxu0 }
 0x866   :  { %v2463_v45 = vadd.f32 %v2693_v31, %v2631_v48  ;;  %v2457_v2 = vpop.f32.mrb[19].mxu0 }
 0x867   :  { %v2458_v22 = vadd.f32 %v2631_v48, %v2457_v2 }
 0x868   :  { %2492 = vmax.xlane.f32.xlu1 %v2463_v45  ;;  %2486 = vmax.xlane.f32.xlu0 %v2448_v47 }
 0x869   :  { %v2696_v5 = vpop.f32.mrb[20].mxu0 }
 0x86a   :  { %v2467_v23 = vpop.f32.mrb[21].mxu0  ;;  %v2473_v11 = vadd.f32 %v2696_v5, %v2631_v48 }
 0x86b   :  { %v2468_v56 = vadd.f32 %v2631_v48, %v2467_v23 }
 0x86c   :  { %2490 = vmax.xlane.f32.xlu1 %v2458_v22 }
 0x86d   :  { %v3451_v51 = vpop.eup %3450  ;;  %2494 = vmax.xlane.f32.xlu0 %v2468_v56 }
 0x86e   :  { %v2345_v58 = vmul.f32 %v3451_v51, %v3449_v62 }
 0x870   :  { %2496 = vmax.xlane.f32.xlu1 %v2473_v11  ;;  %2698 = vmatmul.mubr.f32.gmra.mrb[22].mxu0 %v2345_v58 }
 0x8f1   :  { %v2489_v37 = vpop.xlane.xlu0 %2488 }
 0x8f2   :  { %v2503_v43 = vsub.f32 %v2453_v36, %v2489_v37 }
 0x8f4   :  { %v2512_v27 = vmul.f32 1.442695, %v2503_v43 }
 0x8f5   :  { %v2493_v10 = vpop.xlane.xlu1 %2492  ;;  %v2487_v18 = vpop.xlane.xlu0 %2486 }
 0x8f6   :  { %v2502_v1 = vsub.f32 %v2448_v47, %v2487_v18  ;;  %v2505_v60 = vsub.f32 %v2463_v45, %v2493_v10  ;;  %3452 = vpow2.f32 %v2512_v27 }
 0x8f8   :  { %v2510_v34 = vmul.f32 1.442695, %v2502_v1  ;;  %v2516_v55 = vmul.f32 1.442695, %v2505_v60 }
 0x8f9   :  { %v2491_v21 = vpop.xlane.xlu1 %2490 }
 0x8fa   :  { %v2504_v39 = vsub.f32 %v2458_v22, %v2491_v21  ;;  %v2495_v46 = vpop.xlane.xlu0 %2494  ;;  %3454 = vpow2.f32 %v2510_v34 }
 0x8fb   :  { %v2506_v59 = vsub.f32 %v2468_v56, %v2495_v46  ;;  %3456 = vpow2.f32 %v2516_v55 }
 0x8fc   :  { %v2514_v53 = vmul.f32 1.442695, %v2504_v39 }
 0x8fd   :  { %v2497_v33 = vpop.xlane.xlu1 %2496  ;;  %v2518_v13 = vmul.f32 1.442695, %v2506_v59 }
 0x8fe   :  { %v2507_v4 = vsub.f32 %v2473_v11, %v2497_v33  ;;  %3458 = vpow2.f32 %v2514_v53 }
 0x900   :  { %v2520_v3 = vmul.f32 1.442695, %v2507_v4  ;;  %v3453_v42 = vpop.eup %3452 }
 0x902   :  { %3460 = vpow2.f32 %v2520_v3 }
 0x903   :  { %3462 = vpow2.f32 %v2518_v13 }
 0x904   :  { %v3455_v57 = vpop.eup %3454 }
 0x905   :  { %v3457_v63 = vpop.eup %3456 }
 0x908   :  { %v3459_v8 = vpop.eup %3458 }
 0x90c   :  { %v3461_v12 = vpop.eup %3460 }
 0x90d   :  { %v3463_v49 = vpop.eup %3462 }
 0x943   :  { %v2699_v9 = vpop.f32.mrb[22].mxu0 }
 0x944   :  { %v2483_v16 = vadd.f32 %v2699_v9, %v2631_v48  ;;  %v2477_v32 = vpop.f32.mrb[23].mxu0 }
 0x945   :  { %v2478_v26 = vadd.f32 %v2631_v48, %v2477_v32 }
 0x946   :  { %2500 = vmax.xlane.f32.xlu1 %v2483_v16 }
 0x947   :  { %2498 = vmax.xlane.f32.xlu0 %v2478_v26 }
 0x94a   :  { %2528 = vadd.xlane.f32.xlu1 %v3453_v42 }
 0x94b   :  { %2526 = vadd.xlane.f32.xlu0 %v3455_v57 }
 0x94e   :  { %2532 = vadd.xlane.f32.xlu1 %v3457_v63 }
 0x94f   :  { %2530 = vadd.xlane.f32.xlu0 %v3459_v8 }
 0x952   :  { %2536 = vadd.xlane.f32.xlu1 %v3461_v12 }
 0x953   :  { %2534 = vadd.xlane.f32.xlu0 %v3463_v49 }
 0x9d3   :  { %v2501_v40 = vpop.xlane.xlu1 %2500 }
 0x9d4   :  { %v2509_v41 = vsub.f32 %v2483_v16, %v2501_v40  ;;  %v2499_v17 = vpop.xlane.xlu0 %2498 }
 0x9d5   :  { %v2508_v25 = vsub.f32 %v2478_v26, %v2499_v17 }
 0x9d6   :  { %v2524_v38 = vmul.f32 1.442695, %v2509_v41 }
 0x9d7   :  { %v2522_v44 = vmul.f32 1.442695, %v2508_v25  ;;  %v2529_v6 = vpop.xlane.xlu1 %2528 }
 0x9d8   :  { %3464 = vpow2.f32 %v2524_v38  ;;  %v2527_v28 = vpop.xlane.xlu0 %2526 }
 0x9d9   :  { %3466 = vpow2.f32 %v2522_v44 }
 0x9da   :  { %3468 = vrcp.f32 %v2529_v6 }
 0x9db   :  { %3470 = vrcp.f32 %v2527_v28  ;;  %v2533_v35 = vpop.xlane.xlu1 %2532 }
 0x9dc   :  { %3472 = vrcp.f32 %v2533_v35  ;;  %v2531_v24 = vpop.xlane.xlu0 %2530 }
 0x9dd   :  { %3474 = vrcp.f32 %v2531_v24 }
 0x9df   :  { %v2537_v54 = vpop.xlane.xlu1 %2536 }
 0x9e0   :  { %3476 = vrcp.f32 %v2537_v54  ;;  %v2535_v61 = vpop.xlane.xlu0 %2534 }
 0x9e1   :  { %3478 = vrcp.f32 %v2535_v61 }
 0x9e2   :  { %v3465_v19 = vpop.eup %3464 }
 0x9e3   :  { %v3467_v0 = vpop.eup %3466  ;;  %2540 = vadd.xlane.f32.xlu1 %v3465_v19 }
 0x9e4   :  { %v3469_v20 = vpop.eup %3468  ;;  %2538 = vadd.xlane.f32.xlu0 %v3467_v0 }
 0x9e5   :  { %v3471_v15 = vpop.eup %3470  ;;  %v2551_v29 = vmul.f32 %v3469_v20, %v3453_v42 }
 0x9e6   :  { %v3473_v50 = vpop.eup %3472  ;;  %v2550_v7 = vmul.f32 %v3471_v15, %v3455_v57 }
 0x9e7   :  { %v3475_v48 = vpop.eup %3474  ;;  %2559 = vst [vmem:[#allocation11 + $0x8] sm:$0xff] %v2551_v29  ;;  %v2553_v52 = vmul.f32 %v3473_v50, %v3457_v63 }
 0x9e8   :  { %2558 = vst [vmem:[#allocation11] sm:$0xff] %v2550_v7  ;;  %v2552_v30 = vmul.f32 %v3475_v48, %v3459_v8 }
 0x9e9   :  { %2561 = vst [vmem:[#allocation11 + $0x18] sm:$0xff] %v2553_v52 }
 0x9ea   :  { %v3477_v36 = vpop.eup %3476  ;;  %2560 = vst [vmem:[#allocation11 + $0x10] sm:$0xff] %v2552_v30 }
 0x9eb   :  { %v3479_v14 = vpop.eup %3478  ;;  %v2555_v31 = vmul.f32 %v3477_v36, %v3461_v12 }
 0x9ec   :  { %v2554_v47 = vmul.f32 %v3479_v14, %v3463_v49 }
 0x9ed   :  { %2563 = vst [vmem:[#allocation11 + $0x28] sm:$0xff] %v2555_v31 }
 0x9ee   :  { %2562 = vst [vmem:[#allocation11 + $0x20] sm:$0xff] %v2554_v47 }
 0xa70   :  { %v2541_v45 = vpop.xlane.xlu1 %2540 }
 0xa71   :  { %3480 = vrcp.f32 %v2541_v45  ;;  %v2539_v2 = vpop.xlane.xlu0 %2538 }
 0xa72   :  { %3482 = vrcp.f32 %v2539_v2 }
 0xa7b   :  { %v3481_v5 = vpop.eup %3480 }
 0xa7c   :  { %v3483_v22 = vpop.eup %3482  ;;  %v2557_v23 = vmul.f32 %v3481_v5, %v3465_v19 }
 0xa7d   :  { %v2556_v56 = vmul.f32 %v3483_v22, %v3467_v0 }
 0xa7e   :  { %2565 = vst [vmem:[#allocation11 + $0x38] sm:$0xff] %v2557_v23 }
 0xa7f   :  { %2564 = vst [vmem:[#allocation11 + $0x30] sm:$0xff] %v2556_v56 }
 0xa80   :  { %3539 = shalt.err (!%p3536_p6)
}
 0xa81   :  { %s3540_s12 = scalar_lea.hbm %s4237_s6, 1024 }
 0xa82   :  { %p3541_p7 = scmp.ne.s32.totalorder %s4237_s6, %s3540_s12  ;;  %p3544_p8 = scmp.lt.u32.totalorder %s3540_s12, %s4237_s6 }
 0xa84   :  { %p3546_p9 = pnand %p3544_p8, %p3541_p7 }
 0xa86   :  { %3549 = shalt.err (!%p3546_p9)
}
 0xa87   :  { %2577 = dma.vmem_to_hbm [thread:$0]  %s2572_s8, 1024, %s4237_s6, [#allocation8], %s3560_s2, %s3560_s2, %s3561_s21  }
 0xa88   :  { %3554 = dma.done.wait [#allocation8], 1024  }
 0xa89   :  { %3555 = vsyncadd [#allocation8], 4294966272 }
 0xa8a   :  { %2581 = vsyncpa [#allocation7], 1 }
 0xa8b   :  { %2582 = vsyncpa [#allocation10], 1 }
 0xa8c   :  { %2583 = vsyncpa [#allocation8], 1 }

</bundles_post_ra>
